<compile_context>
chip_gen: v5e
topology: v5e:2x2
jax: 0.10.0
libtpu: 0.0.40
codegen_flags: <defaults>
</compile_context>

<pallas_src>
from functools import partial

import jax
import jax.numpy as jnp
from jax.experimental import pallas as pl
from jax.experimental.pallas import tpu as pltpu

D_MODEL = 32          # input_size
NHEAD = 4
DIM_FF = 2048         # nn.TransformerEncoderLayer default dim_feedforward
NUM_LAYERS = 3
EPS = 1e-5            # LayerNorm default eps
BATCH = 2
SEQ = 8


# ---------------------------------------------------------------------------
# Fused kernel: one grid step per encoder layer, carried state in VMEM scratch,
# mean-pool + Linear(D,3) epilogue on the last step.
# ---------------------------------------------------------------------------
def fused_forward_kernel(nhead,
                         x_ref,
                         wqkv_ref, bqkv_ref, wo_ref, bo_ref,
                         g1_ref, be1_ref, w1_ref, bb1_ref,
                         w2_ref, bb2_ref, g2_ref, be2_ref,
                         fcw_ref, fcb_ref,
                         out_ref,
                         x_scratch):
    B, S, D = x_ref.shape
    hd = D // nhead
    scale = 1.0 / float(hd) ** 0.5
    layer = pl.program_id(0)

    # Load the input once; afterwards the (B*S, D) activation lives in VMEM scratch.
    @pl.when(layer == 0)
    def _():
        x_scratch[...] = x_ref[...].reshape(B * S, D)

    x2 = x_scratch[...]                                        # (B*S, D) float32

    # --- multi-head self-attention (no lane slicing, no concat) ------------
    # wqkv_ref: (3, nhead, D, hd), bqkv_ref: (3, nhead, 1, hd), wo_ref: (nhead, hd, D)
    acc = None
    for h in range(nhead):                                     # static unroll
        qh = jnp.dot(x2, wqkv_ref[0, h], preferred_element_type=jnp.float32) + bqkv_ref[0, h]
        kh = jnp.dot(x2, wqkv_ref[1, h], preferred_element_type=jnp.float32) + bqkv_ref[1, h]
        vh = jnp.dot(x2, wqkv_ref[2, h], preferred_element_type=jnp.float32) + bqkv_ref[2, h]
        qh = qh.reshape(B, S, hd)
        kh = kh.reshape(B, S, hd)
        vh = vh.reshape(B, S, hd)

        s = jnp.einsum('bqd,bkd->bqk', qh, kh,
                       preferred_element_type=jnp.float32) * scale      # (B, S, S)
        s = s - jnp.max(s, axis=-1, keepdims=True)
        p = jnp.exp(s)
        p = p / jnp.sum(p, axis=-1, keepdims=True)                       # exact softmax
        oh = jnp.einsum('bqk,bkd->bqd', p, vh,
                        preferred_element_type=jnp.float32).reshape(B * S, hd)

        # fold the head concat into the output projection: sum_h oh @ Wo_rows[h]
        proj = jnp.dot(oh, wo_ref[h], preferred_element_type=jnp.float32)
        acc = proj if acc is None else acc + proj
    attn = acc + bo_ref[...]

    # residual + LayerNorm1 (f32)
    y = x2 + attn
    mu = jnp.mean(y, axis=-1, keepdims=True)
    var = jnp.mean((y - mu) ** 2, axis=-1, keepdims=True)
    y = (y - mu) * jax.lax.rsqrt(var + EPS) * g1_ref[...] + be1_ref[...]

    # --- feed-forward: bf16 weights/activations at the MXU, f32 accumulate ---
    h1 = jnp.dot(y.astype(jnp.bfloat16), w1_ref[...],
                 preferred_element_type=jnp.float32) + bb1_ref[...]
    h1 = jnp.maximum(h1, 0.0)                                   # relu (f32)
    h2 = jnp.dot(h1.astype(jnp.bfloat16), w2_ref[...],
                 preferred_element_type=jnp.float32) + bb2_ref[...]

    # residual + LayerNorm2 (f32)
    z = y + h2
    mu2 = jnp.mean(z, axis=-1, keepdims=True)
    var2 = jnp.mean((z - mu2) ** 2, axis=-1, keepdims=True)
    xn = (z - mu2) * jax.lax.rsqrt(var2 + EPS) * g2_ref[...] + be2_ref[...]

    x_scratch[...] = xn                                         # carry to next layer

    # --- epilogue: mean over sequence + Linear(D, 3), last layer only -------
    @pl.when(layer == pl.num_programs(0) - 1)
    def _():
        pooled = jnp.sum(xn.reshape(B, S, D), axis=1) * (1.0 / S)        # (B, D)
        out = jnp.dot(pooled, fcw_ref[...], preferred_element_type=jnp.float32) + fcb_ref[...]
        out_ref[...] = out.astype(out_ref.dtype)


# ---------------------------------------------------------------------------
# Wrapper: stack per-layer weights (head-split, pre-transposed, FFN in bf16)
# and launch the single fused pallas_call with a layer-axis grid.
# ---------------------------------------------------------------------------
def stack_layer_params(layers, nhead=NHEAD):
    D = layers[0]["wqkv"].shape[1]
    hd = D // nhead

    def qkv_w(p):
        # PyTorch in_proj_weight (3D, D), rows [q;k;v]; per head: x @ W[h*hd:(h+1)*hd].T
        w = p["wqkv"].reshape(3, nhead, hd, D)
        return jnp.transpose(w, (0, 1, 3, 2))                   # (3, nhead, D, hd)

    def qkv_b(p):
        return p["bqkv"].reshape(3, nhead, 1, hd)               # (3, nhead, 1, hd)

    def out_w(p):
        # out = concat_h(head_h) @ Wo.T  ==  sum_h head_h @ (Wo.T)[h*hd:(h+1)*hd, :]
        return p["wo"].T.reshape(nhead, hd, D)                  # (nhead, hd, D)

    return [
        jnp.stack([qkv_w(p) for p in layers]),                  # (L, 3, nhead, D, hd)
        jnp.stack([qkv_b(p) for p in layers]),                  # (L, 3, nhead, 1, hd)
        jnp.stack([out_w(p) for p in layers]),                  # (L, nhead, hd, D)
        jnp.stack([p["bo"] for p in layers]),                   # (L, 1, D)
        jnp.stack([p["g1"] for p in layers]),                   # (L, 1, D)
        jnp.stack([p["be1"] for p in layers]),                  # (L, 1, D)
        jnp.stack([p["w1"].T for p in layers]).astype(jnp.bfloat16),   # (L, D, FF) bf16
        jnp.stack([p["bb1"] for p in layers]),                  # (L, 1, FF)
        jnp.stack([p["w2"].T for p in layers]).astype(jnp.bfloat16),   # (L, FF, D) bf16
        jnp.stack([p["bb2"] for p in layers]),                  # (L, 1, D)
        jnp.stack([p["g2"] for p in layers]),                   # (L, 1, D)
        jnp.stack([p["be2"] for p in layers]),                  # (L, 1, D)
    ]


def weather_transformer_forward(x, stacked, fc_w, fc_b, nhead=NHEAD):
    B, S, D = x.shape
    L = stacked[0].shape[0]
    fc_wt = fc_w.T                                              # (D, 3)

    def layer_spec(arr):
        nd = arr.ndim
        # block = one layer's slice; squeezed leading layer dim; DMA'd per grid step
        return pl.BlockSpec((None,) + tuple(arr.shape[1:]),
                            lambda l, _n=nd: (l,) + (0,) * (_n - 1))

    def const_spec(arr):
        nd = arr.ndim
        return pl.BlockSpec(tuple(arr.shape), lambda l, _n=nd: (0,) * _n)

    in_specs = ([const_spec(x)]
                + [layer_spec(a) for a in stacked]
                + [const_spec(fc_wt), const_spec(fc_b)])

    return pl.pallas_call(
        partial(fused_forward_kernel, nhead),
        out_shape=jax.ShapeDtypeStruct((B, 3), x.dtype),
        grid=(L,),
        in_specs=in_specs,
        out_specs=pl.BlockSpec((B, 3), lambda l: (0, 0)),
        scratch_shapes=[pltpu.VMEM((B * S, D), jnp.float32)],
        compiler_params=pltpu.CompilerParams(
            dimension_semantics=("arbitrary",)),
    )(x, *stacked, fc_wt, fc_b)


# ---------------------------------------------------------------------------
# Parameter init (deterministic, synthetic) -- PyTorch weight layouts.
# ---------------------------------------------------------------------------
def init_params(key, d_model, dim_ff, num_layers):
    layers = []
    scale = 0.05
    for _ in range(num_layers):
        key, k0, k1, k2, k3 = jax.random.split(key, 5)
        layers.append(dict(
            wqkv=jax.random.normal(k0, (3 * d_model, d_model), jnp.float32) * scale,
            bqkv=jnp.zeros((1, 3 * d_model), jnp.float32),
            wo=jax.random.normal(k1, (d_model, d_model), jnp.float32) * scale,
            bo=jnp.zeros((1, d_model), jnp.float32),
            g1=jnp.ones((1, d_model), jnp.float32),
            be1=jnp.zeros((1, d_model), jnp.float32),
            w1=jax.random.normal(k2, (dim_ff, d_model), jnp.float32) * scale,
            bb1=jnp.zeros((1, dim_ff), jnp.float32),
            w2=jax.random.normal(k3, (d_model, dim_ff), jnp.float32) * scale,
            bb2=jnp.zeros((1, d_model), jnp.float32),
            g2=jnp.ones((1, d_model), jnp.float32),
            be2=jnp.zeros((1, d_model), jnp.float32),
        ))
    key, kf = jax.random.split(key)
    fc_w = jax.random.normal(kf, (3, d_model), jnp.float32) * scale   # Linear(D, 3)
    fc_b = jnp.zeros((1, 3), jnp.float32)
    return layers, fc_w, fc_b


# ---------------------------------------------------------------------------
# Pure-JAX (f32) reference of the PyTorch forward, for a sanity check.
# ---------------------------------------------------------------------------
def reference_forward(x, layers, fc_w, fc_b, nhead=NHEAD):
    B, S, D = x.shape
    hd = D // nhead

    def ln(v, g, b):
        mu = jnp.mean(v, axis=-1, keepdims=True)
        var = jnp.mean((v - mu) ** 2, axis=-1, keepdims=True)
        return (v - mu) * jax.lax.rsqrt(var + EPS) * g + b

    out = x
    for p in layers:
        wqkv, bqkv = p["wqkv"], p["bqkv"].reshape(-1)
        q = out @ wqkv[:D].T + bqkv[:D]
        k = out @ wqkv[D:2 * D].T + bqkv[D:2 * D]
        v = out @ wqkv[2 * D:].T + bqkv[2 * D:]
        qh = q.reshape(B, S, nhead, hd).transpose(0, 2, 1, 3)
        kh = k.reshape(B, S, nhead, hd).transpose(0, 2, 1, 3)
        vh = v.reshape(B, S, nhead, hd).transpose(0, 2, 1, 3)
        s = jnp.einsum('bhqd,bhkd->bhqk', qh, kh) / jnp.sqrt(float(hd))
        a = jax.nn.softmax(s, axis=-1)
        o = jnp.einsum('bhqk,bhkd->bhqd', a, vh).transpose(0, 2, 1, 3).reshape(B, S, D)
        o = o @ p["wo"].T + p["bo"].reshape(-1)
        y = ln(out + o, p["g1"].reshape(-1), p["be1"].reshape(-1))
        h = jnp.maximum(y @ p["w1"].T + p["bb1"].reshape(-1), 0.0)
        h2 = h @ p["w2"].T + p["bb2"].reshape(-1)
        out = ln(y + h2, p["g2"].reshape(-1), p["be2"].reshape(-1))
    pooled = out.mean(axis=1)
    return pooled @ fc_w.T + fc_b.reshape(-1)


if __name__ == "__main__":
    key = jax.random.PRNGKey(0)
    x = jax.random.normal(key, (BATCH, SEQ, D_MODEL), jnp.float32)

    layers, fc_w, fc_b = init_params(jax.random.PRNGKey(42), D_MODEL, DIM_FF, NUM_LAYERS)
    stacked = stack_layer_params(layers)   # head-split / transposed / bf16 FFN, done once

    out = weather_transformer_forward(x, stacked, fc_w, fc_b)
    out = jax.block_until_ready(out)
    assert out.shape == (BATCH, 3), out.shape
    assert jnp.all(jnp.isfinite(out))

    ref = jax.block_until_ready(reference_forward(x, layers, fc_w, fc_b))
    assert jnp.allclose(out, ref, atol=5e-2, rtol=5e-2), float(jnp.max(jnp.abs(out - ref)))

    print("KERNEL_OK")
</pallas_src>

<mosaic_0001>
module attributes {stable_mosaic.version = 11 : i64} {
  func.func @fused_forward_kernel(%arg0: i32, %arg1: memref<2x8x32xf32, #tpu.memory_space<vmem>>, %arg2: memref<1x3x4x32x8xf32, #tpu.memory_space<vmem>>, %arg3: memref<1x3x4x1x8xf32, #tpu.memory_space<vmem>>, %arg4: memref<1x4x8x32xf32, #tpu.memory_space<vmem>>, %arg5: memref<1x1x32xf32, #tpu.memory_space<vmem>>, %arg6: memref<1x1x32xf32, #tpu.memory_space<vmem>>, %arg7: memref<1x1x32xf32, #tpu.memory_space<vmem>>, %arg8: memref<1x32x2048xbf16, #tpu.memory_space<vmem>>, %arg9: memref<1x1x2048xf32, #tpu.memory_space<vmem>>, %arg10: memref<1x2048x32xbf16, #tpu.memory_space<vmem>>, %arg11: memref<1x1x32xf32, #tpu.memory_space<vmem>>, %arg12: memref<1x1x32xf32, #tpu.memory_space<vmem>>, %arg13: memref<1x1x32xf32, #tpu.memory_space<vmem>>, %arg14: memref<32x3xf32, #tpu.memory_space<vmem>>, %arg15: memref<1x3xf32, #tpu.memory_space<vmem>>, %arg16: memref<2x3xf32, #tpu.memory_space<vmem>>, %arg17: memref<16x32xf32, #tpu.memory_space<vmem>>) attributes {dimension_semantics = [#tpu.dimension_semantics<arbitrary>], iteration_bounds = array<i64: 3>, scalar_prefetch = 0 : i64, scratch_operands = 1 : i64, tpu.core_type = #tpu.core_type<tc>, window_params = [{pipeline_mode = #tpu.pipeline_mode<synchronous>, transform_indices = @transform_0, window_bounds = array<i64: 2, 8, 32>}, {transform_indices = @transform_1, window_bounds = array<i64: 1, 3, 4, 32, 8>}, {transform_indices = @transform_2, window_bounds = array<i64: 1, 3, 4, 1, 8>}, {transform_indices = @transform_3, window_bounds = array<i64: 1, 4, 8, 32>}, {transform_indices = @transform_4, window_bounds = array<i64: 1, 1, 32>}, {transform_indices = @transform_5, window_bounds = array<i64: 1, 1, 32>}, {transform_indices = @transform_6, window_bounds = array<i64: 1, 1, 32>}, {transform_indices = @transform_7, window_bounds = array<i64: 1, 32, 2048>}, {transform_indices = @transform_8, window_bounds = array<i64: 1, 1, 2048>}, {transform_indices = @transform_9, window_bounds = array<i64: 1, 2048, 32>}, {transform_indices = @transform_10, window_bounds = array<i64: 1, 1, 32>}, {transform_indices = @transform_11, window_bounds = array<i64: 1, 1, 32>}, {transform_indices = @transform_12, window_bounds = array<i64: 1, 1, 32>}, {pipeline_mode = #tpu.pipeline_mode<synchronous>, transform_indices = @transform_13, window_bounds = array<i64: 32, 3>}, {pipeline_mode = #tpu.pipeline_mode<synchronous>, transform_indices = @transform_14, window_bounds = array<i64: 1, 3>}, {pipeline_mode = #tpu.pipeline_mode<synchronous>, transform_indices = @transform_15, window_bounds = array<i64: 2, 3>}]} {
    %c0_i32 = arith.constant 0 : i32
    %0 = arith.cmpi eq, %arg0, %c0_i32 : i32
    %1 = arith.extui %0 : i1 to i32
    %c0_i32_0 = arith.constant 0 : i32
    %2 = arith.cmpi ne, %1, %c0_i32_0 : i32
    scf.if %2 {
      %c0_213 = arith.constant 0 : index
      %c0_214 = arith.constant 0 : index
      %c0_215 = arith.constant 0 : index
      %251 = vector.load %arg1[%c0_213, %c0_214, %c0_215] : memref<2x8x32xf32, #tpu.memory_space<vmem>>, vector<2x8x32xf32>
      %252 = vector.shape_cast %251 : vector<2x8x32xf32> to vector<16x32xf32>
      %c0_216 = arith.constant 0 : index
      %c0_217 = arith.constant 0 : index
      %253 = vector.load %arg17[%c0_216, %c0_217] : memref<16x32xf32, #tpu.memory_space<vmem>>, vector<16x32xf32>
      tpu.vector_store %arg17[%c0_216, %c0_217], %252 {strides = array<i32>} : memref<16x32xf32, #tpu.memory_space<vmem>>, vector<16x32xf32>,
    } else {
    }
    %c0 = arith.constant 0 : index
    %c0_1 = arith.constant 0 : index
    %3 = vector.load %arg17[%c0, %c0_1] : memref<16x32xf32, #tpu.memory_space<vmem>>, vector<16x32xf32>
    %c0_2 = arith.constant 0 : index
    %c0_3 = arith.constant 0 : index
    %c0_4 = arith.constant 0 : index
    %c0_5 = arith.constant 0 : index
    %c0_6 = arith.constant 0 : index
    %4 = vector.load %arg2[%c0_2, %c0_3, %c0_4, %c0_5, %c0_6] : memref<1x3x4x32x8xf32, #tpu.memory_space<vmem>>, vector<1x1x1x32x8xf32>
    %5 = vector.shape_cast %4 : vector<1x1x1x32x8xf32> to vector<32x8xf32>
    %cst = arith.constant dense<0.000000e+00> : vector<16x8xf32>
    %6 = tpu.matmul %3, %5, %cst {dimension_numbers = #tpu.dot_dimension_numbers<[1], [0], [0], [1], [0, 0, 1, 1], [], []>} : vector<16x32xf32>, vector<32x8xf32>, vector<16x8xf32> -> vector<16x8xf32>
    %c0_7 = arith.constant 0 : index
    %c0_8 = arith.constant 0 : index
    %c0_9 = arith.constant 0 : index
    %c0_10 = arith.constant 0 : index
    %c0_11 = arith.constant 0 : index
    %7 = vector.load %arg3[%c0_7, %c0_8, %c0_9, %c0_10, %c0_11] : memref<1x3x4x1x8xf32, #tpu.memory_space<vmem>>, vector<1x1x1x1x8xf32>
    %8 = vector.shape_cast %7 : vector<1x1x1x1x8xf32> to vector<1x8xf32>
    %9 = vector.broadcast %8 : vector<1x8xf32> to vector<16x8xf32>
    %10 = arith.addf %6, %9 : vector<16x8xf32>
    %c0_12 = arith.constant 0 : index
    %c1 = arith.constant 1 : index
    %c0_13 = arith.constant 0 : index
    %c0_14 = arith.constant 0 : index
    %c0_15 = arith.constant 0 : index
    %11 = vector.load %arg2[%c0_12, %c1, %c0_13, %c0_14, %c0_15] : memref<1x3x4x32x8xf32, #tpu.memory_space<vmem>>, vector<1x1x1x32x8xf32>
    %12 = vector.shape_cast %11 : vector<1x1x1x32x8xf32> to vector<32x8xf32>
    %cst_16 = arith.constant dense<0.000000e+00> : vector<16x8xf32>
    %13 = tpu.matmul %3, %12, %cst_16 {dimension_numbers = #tpu.dot_dimension_numbers<[1], [0], [0], [1], [0, 0, 1, 1], [], []>} : vector<16x32xf32>, vector<32x8xf32>, vector<16x8xf32> -> vector<16x8xf32>
    %c0_17 = arith.constant 0 : index
    %c1_18 = arith.constant 1 : index
    %c0_19 = arith.constant 0 : index
    %c0_20 = arith.constant 0 : index
    %c0_21 = arith.constant 0 : index
    %14 = vector.load %arg3[%c0_17, %c1_18, %c0_19, %c0_20, %c0_21] : memref<1x3x4x1x8xf32, #tpu.memory_space<vmem>>, vector<1x1x1x1x8xf32>
    %15 = vector.shape_cast %14 : vector<1x1x1x1x8xf32> to vector<1x8xf32>
    %16 = vector.broadcast %15 : vector<1x8xf32> to vector<16x8xf32>
    %17 = arith.addf %13, %16 : vector<16x8xf32>
    %c0_22 = arith.constant 0 : index
    %c2 = arith.constant 2 : index
    %c0_23 = arith.constant 0 : index
    %c0_24 = arith.constant 0 : index
    %c0_25 = arith.constant 0 : index
    %18 = vector.load %arg2[%c0_22, %c2, %c0_23, %c0_24, %c0_25] : memref<1x3x4x32x8xf32, #tpu.memory_space<vmem>>, vector<1x1x1x32x8xf32>
    %19 = vector.shape_cast %18 : vector<1x1x1x32x8xf32> to vector<32x8xf32>
    %cst_26 = arith.constant dense<0.000000e+00> : vector<16x8xf32>
    %20 = tpu.matmul %3, %19, %cst_26 {dimension_numbers = #tpu.dot_dimension_numbers<[1], [0], [0], [1], [0, 0, 1, 1], [], []>} : vector<16x32xf32>, vector<32x8xf32>, vector<16x8xf32> -> vector<16x8xf32>
    %c0_27 = arith.constant 0 : index
    %c2_28 = arith.constant 2 : index
    %c0_29 = arith.constant 0 : index
    %c0_30 = arith.constant 0 : index
    %c0_31 = arith.constant 0 : index
    %21 = vector.load %arg3[%c0_27, %c2_28, %c0_29, %c0_30, %c0_31] : memref<1x3x4x1x8xf32, #tpu.memory_space<vmem>>, vector<1x1x1x1x8xf32>
    %22 = vector.shape_cast %21 : vector<1x1x1x1x8xf32> to vector<1x8xf32>
    %23 = vector.broadcast %22 : vector<1x8xf32> to vector<16x8xf32>
    %24 = arith.addf %20, %23 : vector<16x8xf32>
    %25 = vector.shape_cast %10 : vector<16x8xf32> to vector<2x8x8xf32>
    %26 = vector.shape_cast %17 : vector<16x8xf32> to vector<2x8x8xf32>
    %27 = vector.shape_cast %24 : vector<16x8xf32> to vector<2x8x8xf32>
    "tpu.trace_start"() <{level = 10 : i32, message = "bqd,bkd->bqk"}> : () -> ()
    %cst_32 = arith.constant dense<0.000000e+00> : vector<2x8x8xf32>
    %28 = tpu.matmul %25, %26, %cst_32 {dimension_numbers = #tpu.dot_dimension_numbers<[2], [2], [1], [1], [0, 0, 0, 1, 1, 1], [0], [0]>} : vector<2x8x8xf32>, vector<2x8x8xf32>, vector<2x8x8xf32> -> vector<2x8x8xf32>
    "tpu.trace_stop"() : () -> ()
    %cst_33 = arith.constant 0.353553385 : f32
    %29 = vector.broadcast %cst_33 : f32 to vector<2x8x8xf32>
    %30 = arith.mulf %28, %29 : vector<2x8x8xf32>
    %cst_34 = arith.constant dense<0xFF800000> : vector<2x8xf32>
    %31 = vector.multi_reduction <maximumf>, %30, %cst_34 [2] : vector<2x8x8xf32> to vector<2x8xf32>
    %32 = vector.shape_cast %31 : vector<2x8xf32> to vector<2x8x1xf32>
    %33 = vector.broadcast %32 : vector<2x8x1xf32> to vector<2x8x8xf32>
    %34 = arith.subf %30, %33 : vector<2x8x8xf32>
    %35 = math.exp %34 : vector<2x8x8xf32>
    %cst_35 = arith.constant dense<0.000000e+00> : vector<2x8xf32>
    %36 = vector.multi_reduction <add>, %35, %cst_35 [2] : vector<2x8x8xf32> to vector<2x8xf32>
    %37 = vector.shape_cast %36 : vector<2x8xf32> to vector<2x8x1xf32>
    %38 = vector.broadcast %37 : vector<2x8x1xf32> to vector<2x8x8xf32>
    %39 = arith.divf %35, %38 : vector<2x8x8xf32>
    "tpu.trace_start"() <{level = 10 : i32, message = "bqk,bkd->bqd"}> : () -> ()
    %cst_36 = arith.constant dense<0.000000e+00> : vector<2x8x8xf32>
    %40 = tpu.matmul %39, %27, %cst_36 {dimension_numbers = #tpu.dot_dimension_numbers<[2], [1], [1], [2], [0, 0, 0, 1, 1, 2], [0], [0]>} : vector<2x8x8xf32>, vector<2x8x8xf32>, vector<2x8x8xf32> -> vector<2x8x8xf32>
    "tpu.trace_stop"() : () -> ()
    %41 = vector.shape_cast %40 : vector<2x8x8xf32> to vector<16x8xf32>
    %c0_37 = arith.constant 0 : index
    %c0_38 = arith.constant 0 : index
    %c0_39 = arith.constant 0 : index
    %c0_40 = arith.constant 0 : index
    %42 = vector.load %arg4[%c0_37, %c0_38, %c0_39, %c0_40] : memref<1x4x8x32xf32, #tpu.memory_space<vmem>>, vector<1x1x8x32xf32>
    %43 = vector.shape_cast %42 : vector<1x1x8x32xf32> to vector<8x32xf32>
    %cst_41 = arith.constant dense<0.000000e+00> : vector<16x32xf32>
    %44 = tpu.matmul %41, %43, %cst_41 {dimension_numbers = #tpu.dot_dimension_numbers<[1], [0], [0], [1], [0, 0, 1, 1], [], []>} : vector<16x8xf32>, vector<8x32xf32>, vector<16x32xf32> -> vector<16x32xf32>
    %c0_42 = arith.constant 0 : index
    %c0_43 = arith.constant 0 : index
    %c1_44 = arith.constant 1 : index
    %c0_45 = arith.constant 0 : index
    %c0_46 = arith.constant 0 : index
    %45 = vector.load %arg2[%c0_42, %c0_43, %c1_44, %c0_45, %c0_46] : memref<1x3x4x32x8xf32, #tpu.memory_space<vmem>>, vector<1x1x1x32x8xf32>
    %46 = vector.shape_cast %45 : vector<1x1x1x32x8xf32> to vector<32x8xf32>
    %cst_47 = arith.constant dense<0.000000e+00> : vector<16x8xf32>
    %47 = tpu.matmul %3, %46, %cst_47 {dimension_numbers = #tpu.dot_dimension_numbers<[1], [0], [0], [1], [0, 0, 1, 1], [], []>} : vector<16x32xf32>, vector<32x8xf32>, vector<16x8xf32> -> vector<16x8xf32>
    %c0_48 = arith.constant 0 : index
    %c0_49 = arith.constant 0 : index
    %c1_50 = arith.constant 1 : index
    %c0_51 = arith.constant 0 : index
    %c0_52 = arith.constant 0 : index
    %48 = vector.load %arg3[%c0_48, %c0_49, %c1_50, %c0_51, %c0_52] : memref<1x3x4x1x8xf32, #tpu.memory_space<vmem>>, vector<1x1x1x1x8xf32>
    %49 = vector.shape_cast %48 : vector<1x1x1x1x8xf32> to vector<1x8xf32>
    %50 = vector.broadcast %49 : vector<1x8xf32> to vector<16x8xf32>
    %51 = arith.addf %47, %50 : vector<16x8xf32>
    %c0_53 = arith.constant 0 : index
    %c1_54 = arith.constant 1 : index
    %c1_55 = arith.constant 1 : index
    %c0_56 = arith.constant 0 : index
    %c0_57 = arith.constant 0 : index
    %52 = vector.load %arg2[%c0_53, %c1_54, %c1_55, %c0_56, %c0_57] : memref<1x3x4x32x8xf32, #tpu.memory_space<vmem>>, vector<1x1x1x32x8xf32>
    %53 = vector.shape_cast %52 : vector<1x1x1x32x8xf32> to vector<32x8xf32>
    %cst_58 = arith.constant dense<0.000000e+00> : vector<16x8xf32>
    %54 = tpu.matmul %3, %53, %cst_58 {dimension_numbers = #tpu.dot_dimension_numbers<[1], [0], [0], [1], [0, 0, 1, 1], [], []>} : vector<16x32xf32>, vector<32x8xf32>, vector<16x8xf32> -> vector<16x8xf32>
    %c0_59 = arith.constant 0 : index
    %c1_60 = arith.constant 1 : index
    %c1_61 = arith.constant 1 : index
    %c0_62 = arith.constant 0 : index
    %c0_63 = arith.constant 0 : index
    %55 = vector.load %arg3[%c0_59, %c1_60, %c1_61, %c0_62, %c0_63] : memref<1x3x4x1x8xf32, #tpu.memory_space<vmem>>, vector<1x1x1x1x8xf32>
    %56 = vector.shape_cast %55 : vector<1x1x1x1x8xf32> to vector<1x8xf32>
    %57 = vector.broadcast %56 : vector<1x8xf32> to vector<16x8xf32>
    %58 = arith.addf %54, %57 : vector<16x8xf32>
    %c0_64 = arith.constant 0 : index
    %c2_65 = arith.constant 2 : index
    %c1_66 = arith.constant 1 : index
    %c0_67 = arith.constant 0 : index
    %c0_68 = arith.constant 0 : index
    %59 = vector.load %arg2[%c0_64, %c2_65, %c1_66, %c0_67, %c0_68] : memref<1x3x4x32x8xf32, #tpu.memory_space<vmem>>, vector<1x1x1x32x8xf32>
    %60 = vector.shape_cast %59 : vector<1x1x1x32x8xf32> to vector<32x8xf32>
    %cst_69 = arith.constant dense<0.000000e+00> : vector<16x8xf32>
    %61 = tpu.matmul %3, %60, %cst_69 {dimension_numbers = #tpu.dot_dimension_numbers<[1], [0], [0], [1], [0, 0, 1, 1], [], []>} : vector<16x32xf32>, vector<32x8xf32>, vector<16x8xf32> -> vector<16x8xf32>
    %c0_70 = arith.constant 0 : index
    %c2_71 = arith.constant 2 : index
    %c1_72 = arith.constant 1 : index
    %c0_73 = arith.constant 0 : index
    %c0_74 = arith.constant 0 : index
    %62 = vector.load %arg3[%c0_70, %c2_71, %c1_72, %c0_73, %c0_74] : memref<1x3x4x1x8xf32, #tpu.memory_space<vmem>>, vector<1x1x1x1x8xf32>
    %63 = vector.shape_cast %62 : vector<1x1x1x1x8xf32> to vector<1x8xf32>
    %64 = vector.broadcast %63 : vector<1x8xf32> to vector<16x8xf32>
    %65 = arith.addf %61, %64 : vector<16x8xf32>
    %66 = vector.shape_cast %51 : vector<16x8xf32> to vector<2x8x8xf32>
    %67 = vector.shape_cast %58 : vector<16x8xf32> to vector<2x8x8xf32>
    %68 = vector.shape_cast %65 : vector<16x8xf32> to vector<2x8x8xf32>
    "tpu.trace_start"() <{level = 10 : i32, message = "bqd,bkd->bqk"}> : () -> ()
    %cst_75 = arith.constant dense<0.000000e+00> : vector<2x8x8xf32>
    %69 = tpu.matmul %66, %67, %cst_75 {dimension_numbers = #tpu.dot_dimension_numbers<[2], [2], [1], [1], [0, 0, 0, 1, 1, 1], [0], [0]>} : vector<2x8x8xf32>, vector<2x8x8xf32>, vector<2x8x8xf32> -> vector<2x8x8xf32>
    "tpu.trace_stop"() : () -> ()
    %cst_76 = arith.constant 0.353553385 : f32
    %70 = vector.broadcast %cst_76 : f32 to vector<2x8x8xf32>
    %71 = arith.mulf %69, %70 : vector<2x8x8xf32>
    %cst_77 = arith.constant dense<0xFF800000> : vector<2x8xf32>
    %72 = vector.multi_reduction <maximumf>, %71, %cst_77 [2] : vector<2x8x8xf32> to vector<2x8xf32>
    %73 = vector.shape_cast %72 : vector<2x8xf32> to vector<2x8x1xf32>
    %74 = vector.broadcast %73 : vector<2x8x1xf32> to vector<2x8x8xf32>
    %75 = arith.subf %71, %74 : vector<2x8x8xf32>
    %76 = math.exp %75 : vector<2x8x8xf32>
    %cst_78 = arith.constant dense<0.000000e+00> : vector<2x8xf32>
    %77 = vector.multi_reduction <add>, %76, %cst_78 [2] : vector<2x8x8xf32> to vector<2x8xf32>
    %78 = vector.shape_cast %77 : vector<2x8xf32> to vector<2x8x1xf32>
    %79 = vector.broadcast %78 : vector<2x8x1xf32> to vector<2x8x8xf32>
    %80 = arith.divf %76, %79 : vector<2x8x8xf32>
    "tpu.trace_start"() <{level = 10 : i32, message = "bqk,bkd->bqd"}> : () -> ()
    %cst_79 = arith.constant dense<0.000000e+00> : vector<2x8x8xf32>
    %81 = tpu.matmul %80, %68, %cst_79 {dimension_numbers = #tpu.dot_dimension_numbers<[2], [1], [1], [2], [0, 0, 0, 1, 1, 2], [0], [0]>} : vector<2x8x8xf32>, vector<2x8x8xf32>, vector<2x8x8xf32> -> vector<2x8x8xf32>
    "tpu.trace_stop"() : () -> ()
    %82 = vector.shape_cast %81 : vector<2x8x8xf32> to vector<16x8xf32>
    %c0_80 = arith.constant 0 : index
    %c1_81 = arith.constant 1 : index
    %c0_82 = arith.constant 0 : index
    %c0_83 = arith.constant 0 : index
    %83 = vector.load %arg4[%c0_80, %c1_81, %c0_82, %c0_83] : memref<1x4x8x32xf32, #tpu.memory_space<vmem>>, vector<1x1x8x32xf32>
    %84 = vector.shape_cast %83 : vector<1x1x8x32xf32> to vector<8x32xf32>
    %cst_84 = arith.constant dense<0.000000e+00> : vector<16x32xf32>
    %85 = tpu.matmul %82, %84, %cst_84 {dimension_numbers = #tpu.dot_dimension_numbers<[1], [0], [0], [1], [0, 0, 1, 1], [], []>} : vector<16x8xf32>, vector<8x32xf32>, vector<16x32xf32> -> vector<16x32xf32>
    %86 = arith.addf %44, %85 : vector<16x32xf32>
    %c0_85 = arith.constant 0 : index
    %c0_86 = arith.constant 0 : index
    %c2_87 = arith.constant 2 : index
    %c0_88 = arith.constant 0 : index
    %c0_89 = arith.constant 0 : index
    %87 = vector.load %arg2[%c0_85, %c0_86, %c2_87, %c0_88, %c0_89] : memref<1x3x4x32x8xf32, #tpu.memory_space<vmem>>, vector<1x1x1x32x8xf32>
    %88 = vector.shape_cast %87 : vector<1x1x1x32x8xf32> to vector<32x8xf32>
    %cst_90 = arith.constant dense<0.000000e+00> : vector<16x8xf32>
    %89 = tpu.matmul %3, %88, %cst_90 {dimension_numbers = #tpu.dot_dimension_numbers<[1], [0], [0], [1], [0, 0, 1, 1], [], []>} : vector<16x32xf32>, vector<32x8xf32>, vector<16x8xf32> -> vector<16x8xf32>
    %c0_91 = arith.constant 0 : index
    %c0_92 = arith.constant 0 : index
    %c2_93 = arith.constant 2 : index
    %c0_94 = arith.constant 0 : index
    %c0_95 = arith.constant 0 : index
    %90 = vector.load %arg3[%c0_91, %c0_92, %c2_93, %c0_94, %c0_95] : memref<1x3x4x1x8xf32, #tpu.memory_space<vmem>>, vector<1x1x1x1x8xf32>
    %91 = vector.shape_cast %90 : vector<1x1x1x1x8xf32> to vector<1x8xf32>
    %92 = vector.broadcast %91 : vector<1x8xf32> to vector<16x8xf32>
    %93 = arith.addf %89, %92 : vector<16x8xf32>
    %c0_96 = arith.constant 0 : index
    %c1_97 = arith.constant 1 : index
    %c2_98 = arith.constant 2 : index
    %c0_99 = arith.constant 0 : index
    %c0_100 = arith.constant 0 : index
    %94 = vector.load %arg2[%c0_96, %c1_97, %c2_98, %c0_99, %c0_100] : memref<1x3x4x32x8xf32, #tpu.memory_space<vmem>>, vector<1x1x1x32x8xf32>
    %95 = vector.shape_cast %94 : vector<1x1x1x32x8xf32> to vector<32x8xf32>
    %cst_101 = arith.constant dense<0.000000e+00> : vector<16x8xf32>
    %96 = tpu.matmul %3, %95, %cst_101 {dimension_numbers = #tpu.dot_dimension_numbers<[1], [0], [0], [1], [0, 0, 1, 1], [], []>} : vector<16x32xf32>, vector<32x8xf32>, vector<16x8xf32> -> vector<16x8xf32>
    %c0_102 = arith.constant 0 : index
    %c1_103 = arith.constant 1 : index
    %c2_104 = arith.constant 2 : index
    %c0_105 = arith.constant 0 : index
    %c0_106 = arith.constant 0 : index
    %97 = vector.load %arg3[%c0_102, %c1_103, %c2_104, %c0_105, %c0_106] : memref<1x3x4x1x8xf32, #tpu.memory_space<vmem>>, vector<1x1x1x1x8xf32>
    %98 = vector.shape_cast %97 : vector<1x1x1x1x8xf32> to vector<1x8xf32>
    %99 = vector.broadcast %98 : vector<1x8xf32> to vector<16x8xf32>
    %100 = arith.addf %96, %99 : vector<16x8xf32>
    %c0_107 = arith.constant 0 : index
    %c2_108 = arith.constant 2 : index
    %c2_109 = arith.constant 2 : index
    %c0_110 = arith.constant 0 : index
    %c0_111 = arith.constant 0 : index
    %101 = vector.load %arg2[%c0_107, %c2_108, %c2_109, %c0_110, %c0_111] : memref<1x3x4x32x8xf32, #tpu.memory_space<vmem>>, vector<1x1x1x32x8xf32>
    %102 = vector.shape_cast %101 : vector<1x1x1x32x8xf32> to vector<32x8xf32>
    %cst_112 = arith.constant dense<0.000000e+00> : vector<16x8xf32>
    %103 = tpu.matmul %3, %102, %cst_112 {dimension_numbers = #tpu.dot_dimension_numbers<[1], [0], [0], [1], [0, 0, 1, 1], [], []>} : vector<16x32xf32>, vector<32x8xf32>, vector<16x8xf32> -> vector<16x8xf32>
    %c0_113 = arith.constant 0 : index
    %c2_114 = arith.constant 2 : index
    %c2_115 = arith.constant 2 : index
    %c0_116 = arith.constant 0 : index
    %c0_117 = arith.constant 0 : index
    %104 = vector.load %arg3[%c0_113, %c2_114, %c2_115, %c0_116, %c0_117] : memref<1x3x4x1x8xf32, #tpu.memory_space<vmem>>, vector<1x1x1x1x8xf32>
    %105 = vector.shape_cast %104 : vector<1x1x1x1x8xf32> to vector<1x8xf32>
    %106 = vector.broadcast %105 : vector<1x8xf32> to vector<16x8xf32>
    %107 = arith.addf %103, %106 : vector<16x8xf32>
    %108 = vector.shape_cast %93 : vector<16x8xf32> to vector<2x8x8xf32>
    %109 = vector.shape_cast %100 : vector<16x8xf32> to vector<2x8x8xf32>
    %110 = vector.shape_cast %107 : vector<16x8xf32> to vector<2x8x8xf32>
    "tpu.trace_start"() <{level = 10 : i32, message = "bqd,bkd->bqk"}> : () -> ()
    %cst_118 = arith.constant dense<0.000000e+00> : vector<2x8x8xf32>
    %111 = tpu.matmul %108, %109, %cst_118 {dimension_numbers = #tpu.dot_dimension_numbers<[2], [2], [1], [1], [0, 0, 0, 1, 1, 1], [0], [0]>} : vector<2x8x8xf32>, vector<2x8x8xf32>, vector<2x8x8xf32> -> vector<2x8x8xf32>
    "tpu.trace_stop"() : () -> ()
    %cst_119 = arith.constant 0.353553385 : f32
    %112 = vector.broadcast %cst_119 : f32 to vector<2x8x8xf32>
    %113 = arith.mulf %111, %112 : vector<2x8x8xf32>
    %cst_120 = arith.constant dense<0xFF800000> : vector<2x8xf32>
    %114 = vector.multi_reduction <maximumf>, %113, %cst_120 [2] : vector<2x8x8xf32> to vector<2x8xf32>
    %115 = vector.shape_cast %114 : vector<2x8xf32> to vector<2x8x1xf32>
    %116 = vector.broadcast %115 : vector<2x8x1xf32> to vector<2x8x8xf32>
    %117 = arith.subf %113, %116 : vector<2x8x8xf32>
    %118 = math.exp %117 : vector<2x8x8xf32>
    %cst_121 = arith.constant dense<0.000000e+00> : vector<2x8xf32>
    %119 = vector.multi_reduction <add>, %118, %cst_121 [2] : vector<2x8x8xf32> to vector<2x8xf32>
    %120 = vector.shape_cast %119 : vector<2x8xf32> to vector<2x8x1xf32>
    %121 = vector.broadcast %120 : vector<2x8x1xf32> to vector<2x8x8xf32>
    %122 = arith.divf %118, %121 : vector<2x8x8xf32>
    "tpu.trace_start"() <{level = 10 : i32, message = "bqk,bkd->bqd"}> : () -> ()
    %cst_122 = arith.constant dense<0.000000e+00> : vector<2x8x8xf32>
    %123 = tpu.matmul %122, %110, %cst_122 {dimension_numbers = #tpu.dot_dimension_numbers<[2], [1], [1], [2], [0, 0, 0, 1, 1, 2], [0], [0]>} : vector<2x8x8xf32>, vector<2x8x8xf32>, vector<2x8x8xf32> -> vector<2x8x8xf32>
    "tpu.trace_stop"() : () -> ()
    %124 = vector.shape_cast %123 : vector<2x8x8xf32> to vector<16x8xf32>
    %c0_123 = arith.constant 0 : index
    %c2_124 = arith.constant 2 : index
    %c0_125 = arith.constant 0 : index
    %c0_126 = arith.constant 0 : index
    %125 = vector.load %arg4[%c0_123, %c2_124, %c0_125, %c0_126] : memref<1x4x8x32xf32, #tpu.memory_space<vmem>>, vector<1x1x8x32xf32>
    %126 = vector.shape_cast %125 : vector<1x1x8x32xf32> to vector<8x32xf32>
    %cst_127 = arith.constant dense<0.000000e+00> : vector<16x32xf32>
    %127 = tpu.matmul %124, %126, %cst_127 {dimension_numbers = #tpu.dot_dimension_numbers<[1], [0], [0], [1], [0, 0, 1, 1], [], []>} : vector<16x8xf32>, vector<8x32xf32>, vector<16x32xf32> -> vector<16x32xf32>
    %128 = arith.addf %86, %127 : vector<16x32xf32>
    %c0_128 = arith.constant 0 : index
    %c0_129 = arith.constant 0 : index
    %c3 = arith.constant 3 : index
    %c0_130 = arith.constant 0 : index
    %c0_131 = arith.constant 0 : index
    %129 = vector.load %arg2[%c0_128, %c0_129, %c3, %c0_130, %c0_131] : memref<1x3x4x32x8xf32, #tpu.memory_space<vmem>>, vector<1x1x1x32x8xf32>
    %130 = vector.shape_cast %129 : vector<1x1x1x32x8xf32> to vector<32x8xf32>
    %cst_132 = arith.constant dense<0.000000e+00> : vector<16x8xf32>
    %131 = tpu.matmul %3, %130, %cst_132 {dimension_numbers = #tpu.dot_dimension_numbers<[1], [0], [0], [1], [0, 0, 1, 1], [], []>} : vector<16x32xf32>, vector<32x8xf32>, vector<16x8xf32> -> vector<16x8xf32>
    %c0_133 = arith.constant 0 : index
    %c0_134 = arith.constant 0 : index
    %c3_135 = arith.constant 3 : index
    %c0_136 = arith.constant 0 : index
    %c0_137 = arith.constant 0 : index
    %132 = vector.load %arg3[%c0_133, %c0_134, %c3_135, %c0_136, %c0_137] : memref<1x3x4x1x8xf32, #tpu.memory_space<vmem>>, vector<1x1x1x1x8xf32>
    %133 = vector.shape_cast %132 : vector<1x1x1x1x8xf32> to vector<1x8xf32>
    %134 = vector.broadcast %133 : vector<1x8xf32> to vector<16x8xf32>
    %135 = arith.addf %131, %134 : vector<16x8xf32>
    %c0_138 = arith.constant 0 : index
    %c1_139 = arith.constant 1 : index
    %c3_140 = arith.constant 3 : index
    %c0_141 = arith.constant 0 : index
    %c0_142 = arith.constant 0 : index
    %136 = vector.load %arg2[%c0_138, %c1_139, %c3_140, %c0_141, %c0_142] : memref<1x3x4x32x8xf32, #tpu.memory_space<vmem>>, vector<1x1x1x32x8xf32>
    %137 = vector.shape_cast %136 : vector<1x1x1x32x8xf32> to vector<32x8xf32>
    %cst_143 = arith.constant dense<0.000000e+00> : vector<16x8xf32>
    %138 = tpu.matmul %3, %137, %cst_143 {dimension_numbers = #tpu.dot_dimension_numbers<[1], [0], [0], [1], [0, 0, 1, 1], [], []>} : vector<16x32xf32>, vector<32x8xf32>, vector<16x8xf32> -> vector<16x8xf32>
    %c0_144 = arith.constant 0 : index
    %c1_145 = arith.constant 1 : index
    %c3_146 = arith.constant 3 : index
    %c0_147 = arith.constant 0 : index
    %c0_148 = arith.constant 0 : index
    %139 = vector.load %arg3[%c0_144, %c1_145, %c3_146, %c0_147, %c0_148] : memref<1x3x4x1x8xf32, #tpu.memory_space<vmem>>, vector<1x1x1x1x8xf32>
    %140 = vector.shape_cast %139 : vector<1x1x1x1x8xf32> to vector<1x8xf32>
    %141 = vector.broadcast %140 : vector<1x8xf32> to vector<16x8xf32>
    %142 = arith.addf %138, %141 : vector<16x8xf32>
    %c0_149 = arith.constant 0 : index
    %c2_150 = arith.constant 2 : index
    %c3_151 = arith.constant 3 : index
    %c0_152 = arith.constant 0 : index
    %c0_153 = arith.constant 0 : index
    %143 = vector.load %arg2[%c0_149, %c2_150, %c3_151, %c0_152, %c0_153] : memref<1x3x4x32x8xf32, #tpu.memory_space<vmem>>, vector<1x1x1x32x8xf32>
    %144 = vector.shape_cast %143 : vector<1x1x1x32x8xf32> to vector<32x8xf32>
    %cst_154 = arith.constant dense<0.000000e+00> : vector<16x8xf32>
    %145 = tpu.matmul %3, %144, %cst_154 {dimension_numbers = #tpu.dot_dimension_numbers<[1], [0], [0], [1], [0, 0, 1, 1], [], []>} : vector<16x32xf32>, vector<32x8xf32>, vector<16x8xf32> -> vector<16x8xf32>
    %c0_155 = arith.constant 0 : index
    %c2_156 = arith.constant 2 : index
    %c3_157 = arith.constant 3 : index
    %c0_158 = arith.constant 0 : index
    %c0_159 = arith.constant 0 : index
    %146 = vector.load %arg3[%c0_155, %c2_156, %c3_157, %c0_158, %c0_159] : memref<1x3x4x1x8xf32, #tpu.memory_space<vmem>>, vector<1x1x1x1x8xf32>
    %147 = vector.shape_cast %146 : vector<1x1x1x1x8xf32> to vector<1x8xf32>
    %148 = vector.broadcast %147 : vector<1x8xf32> to vector<16x8xf32>
    %149 = arith.addf %145, %148 : vector<16x8xf32>
    %150 = vector.shape_cast %135 : vector<16x8xf32> to vector<2x8x8xf32>
    %151 = vector.shape_cast %142 : vector<16x8xf32> to vector<2x8x8xf32>
    %152 = vector.shape_cast %149 : vector<16x8xf32> to vector<2x8x8xf32>
    "tpu.trace_start"() <{level = 10 : i32, message = "bqd,bkd->bqk"}> : () -> ()
    %cst_160 = arith.constant dense<0.000000e+00> : vector<2x8x8xf32>
    %153 = tpu.matmul %150, %151, %cst_160 {dimension_numbers = #tpu.dot_dimension_numbers<[2], [2], [1], [1], [0, 0, 0, 1, 1, 1], [0], [0]>} : vector<2x8x8xf32>, vector<2x8x8xf32>, vector<2x8x8xf32> -> vector<2x8x8xf32>
    "tpu.trace_stop"() : () -> ()
    %cst_161 = arith.constant 0.353553385 : f32
    %154 = vector.broadcast %cst_161 : f32 to vector<2x8x8xf32>
    %155 = arith.mulf %153, %154 : vector<2x8x8xf32>
    %cst_162 = arith.constant dense<0xFF800000> : vector<2x8xf32>
    %156 = vector.multi_reduction <maximumf>, %155, %cst_162 [2] : vector<2x8x8xf32> to vector<2x8xf32>
    %157 = vector.shape_cast %156 : vector<2x8xf32> to vector<2x8x1xf32>
    %158 = vector.broadcast %157 : vector<2x8x1xf32> to vector<2x8x8xf32>
    %159 = arith.subf %155, %158 : vector<2x8x8xf32>
    %160 = math.exp %159 : vector<2x8x8xf32>
    %cst_163 = arith.constant dense<0.000000e+00> : vector<2x8xf32>
    %161 = vector.multi_reduction <add>, %160, %cst_163 [2] : vector<2x8x8xf32> to vector<2x8xf32>
    %162 = vector.shape_cast %161 : vector<2x8xf32> to vector<2x8x1xf32>
    %163 = vector.broadcast %162 : vector<2x8x1xf32> to vector<2x8x8xf32>
    %164 = arith.divf %160, %163 : vector<2x8x8xf32>
    "tpu.trace_start"() <{level = 10 : i32, message = "bqk,bkd->bqd"}> : () -> ()
    %cst_164 = arith.constant dense<0.000000e+00> : vector<2x8x8xf32>
    %165 = tpu.matmul %164, %152, %cst_164 {dimension_numbers = #tpu.dot_dimension_numbers<[2], [1], [1], [2], [0, 0, 0, 1, 1, 2], [0], [0]>} : vector<2x8x8xf32>, vector<2x8x8xf32>, vector<2x8x8xf32> -> vector<2x8x8xf32>
    "tpu.trace_stop"() : () -> ()
    %166 = vector.shape_cast %165 : vector<2x8x8xf32> to vector<16x8xf32>
    %c0_165 = arith.constant 0 : index
    %c3_166 = arith.constant 3 : index
    %c0_167 = arith.constant 0 : index
    %c0_168 = arith.constant 0 : index
    %167 = vector.load %arg4[%c0_165, %c3_166, %c0_167, %c0_168] : memref<1x4x8x32xf32, #tpu.memory_space<vmem>>, vector<1x1x8x32xf32>
    %168 = vector.shape_cast %167 : vector<1x1x8x32xf32> to vector<8x32xf32>
    %cst_169 = arith.constant dense<0.000000e+00> : vector<16x32xf32>
    %169 = tpu.matmul %166, %168, %cst_169 {dimension_numbers = #tpu.dot_dimension_numbers<[1], [0], [0], [1], [0, 0, 1, 1], [], []>} : vector<16x8xf32>, vector<8x32xf32>, vector<16x32xf32> -> vector<16x32xf32>
    %170 = arith.addf %128, %169 : vector<16x32xf32>
    %c0_170 = arith.constant 0 : index
    %c0_171 = arith.constant 0 : index
    %c0_172 = arith.constant 0 : index
    %171 = vector.load %arg5[%c0_170, %c0_171, %c0_172] : memref<1x1x32xf32, #tpu.memory_space<vmem>>, vector<1x1x32xf32>
    %172 = vector.shape_cast %171 : vector<1x1x32xf32> to vector<1x32xf32>
    %173 = vector.broadcast %172 : vector<1x32xf32> to vector<16x32xf32>
    %174 = arith.addf %170, %173 : vector<16x32xf32>
    %175 = arith.addf %3, %174 : vector<16x32xf32>
    %cst_173 = arith.constant dense<0.000000e+00> : vector<16xf32>
    %176 = vector.multi_reduction <add>, %175, %cst_173 [1] : vector<16x32xf32> to vector<16xf32>
    %177 = vector.shape_cast %176 : vector<16xf32> to vector<16x1xf32>
    %cst_174 = arith.constant 3.200000e+01 : f32
    %178 = vector.broadcast %cst_174 : f32 to vector<16x1xf32>
    %179 = arith.divf %177, %178 : vector<16x1xf32>
    %180 = vector.broadcast %179 : vector<16x1xf32> to vector<16x32xf32>
    %181 = arith.subf %175, %180 : vector<16x32xf32>
    %182 = arith.mulf %181, %181 : vector<16x32xf32>
    %cst_175 = arith.constant dense<0.000000e+00> : vector<16xf32>
    %183 = vector.multi_reduction <add>, %182, %cst_175 [1] : vector<16x32xf32> to vector<16xf32>
    %184 = vector.shape_cast %183 : vector<16xf32> to vector<16x1xf32>
    %cst_176 = arith.constant 3.200000e+01 : f32
    %185 = vector.broadcast %cst_176 : f32 to vector<16x1xf32>
    %186 = arith.divf %184, %185 : vector<16x1xf32>
    %187 = vector.broadcast %179 : vector<16x1xf32> to vector<16x32xf32>
    %188 = arith.subf %175, %187 : vector<16x32xf32>
    %cst_177 = arith.constant 9.99999974E-6 : f32
    %189 = vector.broadcast %cst_177 : f32 to vector<16x1xf32>
    %190 = arith.addf %186, %189 : vector<16x1xf32>
    %191 = math.rsqrt %190 : vector<16x1xf32>
    %192 = vector.broadcast %191 : vector<16x1xf32> to vector<16x32xf32>
    %193 = arith.mulf %188, %192 : vector<16x32xf32>
    %c0_178 = arith.constant 0 : index
    %c0_179 = arith.constant 0 : index
    %c0_180 = arith.constant 0 : index
    %194 = vector.load %arg6[%c0_178, %c0_179, %c0_180] : memref<1x1x32xf32, #tpu.memory_space<vmem>>, vector<1x1x32xf32>
    %195 = vector.shape_cast %194 : vector<1x1x32xf32> to vector<1x32xf32>
    %196 = vector.broadcast %195 : vector<1x32xf32> to vector<16x32xf32>
    %197 = arith.mulf %193, %196 : vector<16x32xf32>
    %c0_181 = arith.constant 0 : index
    %c0_182 = arith.constant 0 : index
    %c0_183 = arith.constant 0 : index
    %198 = vector.load %arg7[%c0_181, %c0_182, %c0_183] : memref<1x1x32xf32, #tpu.memory_space<vmem>>, vector<1x1x32xf32>
    %199 = vector.shape_cast %198 : vector<1x1x32xf32> to vector<1x32xf32>
    %200 = vector.broadcast %199 : vector<1x32xf32> to vector<16x32xf32>
    %201 = arith.addf %197, %200 : vector<16x32xf32>
    %202 = arith.truncf %201 : vector<16x32xf32> to vector<16x32xbf16>
    %c0_184 = arith.constant 0 : index
    %c0_185 = arith.constant 0 : index
    %c0_186 = arith.constant 0 : index
    %203 = vector.load %arg8[%c0_184, %c0_185, %c0_186] : memref<1x32x2048xbf16, #tpu.memory_space<vmem>>, vector<1x32x2048xbf16>
    %204 = vector.shape_cast %203 : vector<1x32x2048xbf16> to vector<32x2048xbf16>
    %cst_187 = arith.constant dense<0.000000e+00> : vector<16x2048xf32>
    %205 = tpu.matmul %202, %204, %cst_187 {dimension_numbers = #tpu.dot_dimension_numbers<[1], [0], [0], [1], [0, 0, 1, 1], [], []>} : vector<16x32xbf16>, vector<32x2048xbf16>, vector<16x2048xf32> -> vector<16x2048xf32>
    %c0_188 = arith.constant 0 : index
    %c0_189 = arith.constant 0 : index
    %c0_190 = arith.constant 0 : index
    %206 = vector.load %arg9[%c0_188, %c0_189, %c0_190] : memref<1x1x2048xf32, #tpu.memory_space<vmem>>, vector<1x1x2048xf32>
    %207 = vector.shape_cast %206 : vector<1x1x2048xf32> to vector<1x2048xf32>
    %208 = vector.broadcast %207 : vector<1x2048xf32> to vector<16x2048xf32>
    %209 = arith.addf %205, %208 : vector<16x2048xf32>
    %cst_191 = arith.constant 0.000000e+00 : f32
    %210 = vector.broadcast %cst_191 : f32 to vector<16x2048xf32>
    %211 = arith.maximumf %209, %210 : vector<16x2048xf32>
    %212 = arith.truncf %211 : vector<16x2048xf32> to vector<16x2048xbf16>
    %c0_192 = arith.constant 0 : index
    %c0_193 = arith.constant 0 : index
    %c0_194 = arith.constant 0 : index
    %213 = vector.load %arg10[%c0_192, %c0_193, %c0_194] : memref<1x2048x32xbf16, #tpu.memory_space<vmem>>, vector<1x2048x32xbf16>
    %214 = vector.shape_cast %213 : vector<1x2048x32xbf16> to vector<2048x32xbf16>
    %cst_195 = arith.constant dense<0.000000e+00> : vector<16x32xf32>
    %215 = tpu.matmul %212, %214, %cst_195 {dimension_numbers = #tpu.dot_dimension_numbers<[1], [0], [0], [1], [0, 0, 1, 1], [], []>} : vector<16x2048xbf16>, vector<2048x32xbf16>, vector<16x32xf32> -> vector<16x32xf32>
    %c0_196 = arith.constant 0 : index
    %c0_197 = arith.constant 0 : index
    %c0_198 = arith.constant 0 : index
    %216 = vector.load %arg11[%c0_196, %c0_197, %c0_198] : memref<1x1x32xf32, #tpu.memory_space<vmem>>, vector<1x1x32xf32>
    %217 = vector.shape_cast %216 : vector<1x1x32xf32> to vector<1x32xf32>
    %218 = vector.broadcast %217 : vector<1x32xf32> to vector<16x32xf32>
    %219 = arith.addf %215, %218 : vector<16x32xf32>
    %220 = arith.addf %201, %219 : vector<16x32xf32>
    %cst_199 = arith.constant dense<0.000000e+00> : vector<16xf32>
    %221 = vector.multi_reduction <add>, %220, %cst_199 [1] : vector<16x32xf32> to vector<16xf32>
    %222 = vector.shape_cast %221 : vector<16xf32> to vector<16x1xf32>
    %cst_200 = arith.constant 3.200000e+01 : f32
    %223 = vector.broadcast %cst_200 : f32 to vector<16x1xf32>
    %224 = arith.divf %222, %223 : vector<16x1xf32>
    %225 = vector.broadcast %224 : vector<16x1xf32> to vector<16x32xf32>
    %226 = arith.subf %220, %225 : vector<16x32xf32>
    %227 = arith.mulf %226, %226 : vector<16x32xf32>
    %cst_201 = arith.constant dense<0.000000e+00> : vector<16xf32>
    %228 = vector.multi_reduction <add>, %227, %cst_201 [1] : vector<16x32xf32> to vector<16xf32>
    %229 = vector.shape_cast %228 : vector<16xf32> to vector<16x1xf32>
    %cst_202 = arith.constant 3.200000e+01 : f32
    %230 = vector.broadcast %cst_202 : f32 to vector<16x1xf32>
    %231 = arith.divf %229, %230 : vector<16x1xf32>
    %232 = vector.broadcast %224 : vector<16x1xf32> to vector<16x32xf32>
    %233 = arith.subf %220, %232 : vector<16x32xf32>
    %cst_203 = arith.constant 9.99999974E-6 : f32
    %234 = vector.broadcast %cst_203 : f32 to vector<16x1xf32>
    %235 = arith.addf %231, %234 : vector<16x1xf32>
    %236 = math.rsqrt %235 : vector<16x1xf32>
    %237 = vector.broadcast %236 : vector<16x1xf32> to vector<16x32xf32>
    %238 = arith.mulf %233, %237 : vector<16x32xf32>
    %c0_204 = arith.constant 0 : index
    %c0_205 = arith.constant 0 : index
    %c0_206 = arith.constant 0 : index
    %239 = vector.load %arg12[%c0_204, %c0_205, %c0_206] : memref<1x1x32xf32, #tpu.memory_space<vmem>>, vector<1x1x32xf32>
    %240 = vector.shape_cast %239 : vector<1x1x32xf32> to vector<1x32xf32>
    %241 = vector.broadcast %240 : vector<1x32xf32> to vector<16x32xf32>
    %242 = arith.mulf %238, %241 : vector<16x32xf32>
    %c0_207 = arith.constant 0 : index
    %c0_208 = arith.constant 0 : index
    %c0_209 = arith.constant 0 : index
    %243 = vector.load %arg13[%c0_207, %c0_208, %c0_209] : memref<1x1x32xf32, #tpu.memory_space<vmem>>, vector<1x1x32xf32>
    %244 = vector.shape_cast %243 : vector<1x1x32xf32> to vector<1x32xf32>
    %245 = vector.broadcast %244 : vector<1x32xf32> to vector<16x32xf32>
    %246 = arith.addf %242, %245 : vector<16x32xf32>
    %c0_210 = arith.constant 0 : index
    %c0_211 = arith.constant 0 : index
    %247 = vector.load %arg17[%c0_210, %c0_211] : memref<16x32xf32, #tpu.memory_space<vmem>>, vector<16x32xf32>
    tpu.vector_store %arg17[%c0_210, %c0_211], %246 {strides = array<i32>} : memref<16x32xf32, #tpu.memory_space<vmem>>, vector<16x32xf32>,
    %c2_i32 = arith.constant 2 : i32
    %248 = arith.cmpi eq, %arg0, %c2_i32 : i32
    %249 = arith.extui %248 : i1 to i32
    %c0_i32_212 = arith.constant 0 : i32
    %250 = arith.cmpi ne, %249, %c0_i32_212 : i32
    scf.if %250 {
      %251 = vector.shape_cast %246 : vector<16x32xf32> to vector<2x8x32xf32>
      %cst_213 = arith.constant dense<0.000000e+00> : vector<2x32xf32>
      %252 = vector.multi_reduction <add>, %251, %cst_213 [1] : vector<2x8x32xf32> to vector<2x32xf32>
      %cst_214 = arith.constant 1.250000e-01 : f32
      %253 = vector.broadcast %cst_214 : f32 to vector<2x32xf32>
      %254 = arith.mulf %252, %253 : vector<2x32xf32>
      %c0_215 = arith.constant 0 : index
      %c0_216 = arith.constant 0 : index
      %255 = vector.load %arg14[%c0_215, %c0_216] : memref<32x3xf32, #tpu.memory_space<vmem>>, vector<32x3xf32>
      %cst_217 = arith.constant dense<0.000000e+00> : vector<2x3xf32>
      %256 = tpu.matmul %254, %255, %cst_217 {dimension_numbers = #tpu.dot_dimension_numbers<[1], [0], [0], [1], [0, 0, 1, 1], [], []>} : vector<2x32xf32>, vector<32x3xf32>, vector<2x3xf32> -> vector<2x3xf32>
      %c0_218 = arith.constant 0 : index
      %c0_219 = arith.constant 0 : index
      %257 = vector.load %arg15[%c0_218, %c0_219] : memref<1x3xf32, #tpu.memory_space<vmem>>, vector<1x3xf32>
      %258 = vector.broadcast %257 : vector<1x3xf32> to vector<2x3xf32>
      %259 = arith.addf %256, %258 : vector<2x3xf32>
      %c0_220 = arith.constant 0 : index
      %c0_221 = arith.constant 0 : index
      %260 = vector.load %arg16[%c0_220, %c0_221] : memref<2x3xf32, #tpu.memory_space<vmem>>, vector<2x3xf32>
      tpu.vector_store %arg16[%c0_220, %c0_221], %259 {strides = array<i32>} : memref<2x3xf32, #tpu.memory_space<vmem>>, vector<2x3xf32>,
    } else {
    }
    return
  }
  func.func @transform_0(%arg0: i32) -> (i32, i32, i32) {
    %c0_i32 = arith.constant 0 : i32
    %c0_i32_0 = arith.constant 0 : i32
    %c0_i32_1 = arith.constant 0 : i32
    %c0_i32_2 = arith.constant 0 : i32
    return %c0_i32, %c0_i32_0, %c0_i32_1 : i32, i32, i32
  }
  func.func @transform_1(%arg0: i32) -> (i32, i32, i32, i32, i32) {
    %c0_i32 = arith.constant 0 : i32
    %c0_i32_0 = arith.constant 0 : i32
    %c0_i32_1 = arith.constant 0 : i32
    %c0_i32_2 = arith.constant 0 : i32
    %c0_i32_3 = arith.constant 0 : i32
    return %arg0, %c0_i32, %c0_i32_0, %c0_i32_1, %c0_i32_2 : i32, i32, i32, i32, i32
  }
  func.func @transform_2(%arg0: i32) -> (i32, i32, i32, i32, i32) {
    %c0_i32 = arith.constant 0 : i32
    %c0_i32_0 = arith.constant 0 : i32
    %c0_i32_1 = arith.constant 0 : i32
    %c0_i32_2 = arith.constant 0 : i32
    %c0_i32_3 = arith.constant 0 : i32
    return %arg0, %c0_i32, %c0_i32_0, %c0_i32_1, %c0_i32_2 : i32, i32, i32, i32, i32
  }
  func.func @transform_3(%arg0: i32) -> (i32, i32, i32, i32) {
    %c0_i32 = arith.constant 0 : i32
    %c0_i32_0 = arith.constant 0 : i32
    %c0_i32_1 = arith.constant 0 : i32
    %c0_i32_2 = arith.constant 0 : i32
    return %arg0, %c0_i32, %c0_i32_0, %c0_i32_1 : i32, i32, i32, i32
  }
  func.func @transform_4(%arg0: i32) -> (i32, i32, i32) {
    %c0_i32 = arith.constant 0 : i32
    %c0_i32_0 = arith.constant 0 : i32
    %c0_i32_1 = arith.constant 0 : i32
    return %arg0, %c0_i32, %c0_i32_0 : i32, i32, i32
  }
  func.func @transform_5(%arg0: i32) -> (i32, i32, i32) {
    %c0_i32 = arith.constant 0 : i32
    %c0_i32_0 = arith.constant 0 : i32
    %c0_i32_1 = arith.constant 0 : i32
    return %arg0, %c0_i32, %c0_i32_0 : i32, i32, i32
  }
  func.func @transform_6(%arg0: i32) -> (i32, i32, i32) {
    %c0_i32 = arith.constant 0 : i32
    %c0_i32_0 = arith.constant 0 : i32
    %c0_i32_1 = arith.constant 0 : i32
    return %arg0, %c0_i32, %c0_i32_0 : i32, i32, i32
  }
  func.func @transform_7(%arg0: i32) -> (i32, i32, i32) {
    %c0_i32 = arith.constant 0 : i32
    %c0_i32_0 = arith.constant 0 : i32
    %c0_i32_1 = arith.constant 0 : i32
    return %arg0, %c0_i32, %c0_i32_0 : i32, i32, i32
  }
  func.func @transform_8(%arg0: i32) -> (i32, i32, i32) {
    %c0_i32 = arith.constant 0 : i32
    %c0_i32_0 = arith.constant 0 : i32
    %c0_i32_1 = arith.constant 0 : i32
    return %arg0, %c0_i32, %c0_i32_0 : i32, i32, i32
  }
  func.func @transform_9(%arg0: i32) -> (i32, i32, i32) {
    %c0_i32 = arith.constant 0 : i32
    %c0_i32_0 = arith.constant 0 : i32
    %c0_i32_1 = arith.constant 0 : i32
    return %arg0, %c0_i32, %c0_i32_0 : i32, i32, i32
  }
  func.func @transform_10(%arg0: i32) -> (i32, i32, i32) {
    %c0_i32 = arith.constant 0 : i32
    %c0_i32_0 = arith.constant 0 : i32
    %c0_i32_1 = arith.constant 0 : i32
    return %arg0, %c0_i32, %c0_i32_0 : i32, i32, i32
  }
  func.func @transform_11(%arg0: i32) -> (i32, i32, i32) {
    %c0_i32 = arith.constant 0 : i32
    %c0_i32_0 = arith.constant 0 : i32
    %c0_i32_1 = arith.constant 0 : i32
    return %arg0, %c0_i32, %c0_i32_0 : i32, i32, i32
  }
  func.func @transform_12(%arg0: i32) -> (i32, i32, i32) {
    %c0_i32 = arith.constant 0 : i32
    %c0_i32_0 = arith.constant 0 : i32
    %c0_i32_1 = arith.constant 0 : i32
    return %arg0, %c0_i32, %c0_i32_0 : i32, i32, i32
  }
  func.func @transform_13(%arg0: i32) -> (i32, i32) {
    %c0_i32 = arith.constant 0 : i32
    %c0_i32_0 = arith.constant 0 : i32
    %c0_i32_1 = arith.constant 0 : i32
    return %c0_i32, %c0_i32_0 : i32, i32
  }
  func.func @transform_14(%arg0: i32) -> (i32, i32) {
    %c0_i32 = arith.constant 0 : i32
    %c0_i32_0 = arith.constant 0 : i32
    %c0_i32_1 = arith.constant 0 : i32
    return %c0_i32, %c0_i32_0 : i32, i32
  }
  func.func @transform_15(%arg0: i32) -> (i32, i32) {
    %c0_i32 = arith.constant 0 : i32
    %c0_i32_0 = arith.constant 0 : i32
    %c0_i32_1 = arith.constant 0 : i32
    return %c0_i32, %c0_i32_0 : i32, i32
  }
}

</mosaic_0001>

<bundles_post_ra>
// kernel: tpu_custom_call.1
= control target key start
LH: loop header
LB: loop body
LE: loop exit
PB: predicated region body
PF: predicated region fallthrough
CT: control target
= control target key end

     0   :  { %s5665_s0 = inlined_call_operand.vmem [shape: f32[2,8,32], index: 0, kind: input, shape index: {}]   ;;  %s5666_s1 = inlined_call_operand.vmem [shape: f32[3,3,4,32,8], index: 1, kind: input, shape index: {}]   ;;  %s5667_s2 = inlined_call_operand.vmem [shape: f32[3,3,4,1,8], index: 2, kind: input, shape index: {}]   ;;  %s5668_s3 = inlined_call_operand.vmem [shape: f32[3,4,8,32], index: 3, kind: input, shape index: {}]   ;;  %s5669_s4 = inlined_call_operand.vmem [shape: f32[3,1,32], index: 4, kind: input, shape index: {}]   ;;  %s5670_s5 = inlined_call_operand.vmem [shape: f32[3,1,32], index: 5, kind: input, shape index: {}]   ;;  %s5671_s6 = inlined_call_operand.vmem [shape: f32[3,1,32], index: 6, kind: input, shape index: {}]   ;;  %s5672_s7 = inlined_call_operand.vmem [shape: bf16[3,32,2048], index: 7, kind: input, shape index: {}]   ;;  %s5673_s8 = inlined_call_operand.vmem [shape: f32[3,1,2048], index: 8, kind: input, shape index: {}]   ;;  %s5674_s9 = inlined_call_operand.vmem [shape: bf16[3,2048,32], index: 9, kind: input, shape index: {}]   ;;  %s5675_s10 = inlined_call_operand.vmem [shape: f32[3,1,32], index: 10, kind: input, shape index: {}]   ;;  %s5676_s11 = inlined_call_operand.vmem [shape: f32[3,1,32], index: 11, kind: input, shape index: {}]   ;;  %s5677_s12 = inlined_call_operand.vmem [shape: f32[3,1,32], index: 12, kind: input, shape index: {}]   ;;  %s5678_s13 = inlined_call_operand.vmem [shape: f32[32,3], index: 13, kind: input, shape index: {}]   ;;  %s5679_s14 = inlined_call_operand.vmem [shape: f32[1,3], index: 14, kind: input, shape index: {}]   ;;  %s5680_s15 = inlined_call_operand.hbm [shape: f32[2,3], index: 15, kind: output, shape index: {}]  }
   0x1   :  { %5684 = sst [smem:[#allocation7_spill]] %s5665_s0 }
   0x2   :  { %5685 = sst [smem:[#allocation8_spill]] %s5666_s1 }
   0x3   :  { %5686 = sst [smem:[#allocation9_spill]] %s5667_s2 }
   0x4   :  { %5687 = sst [smem:[#allocation10_spill]] %s5668_s3 }
   0x5   :  { %5688 = sst [smem:[#allocation11_spill]] %s5678_s13 }
   0x6   :  { %5689 = sst [smem:[#allocation12_spill]] %s5679_s14 }
   0x7   :  { %5690 = sst [smem:[#allocation13_spill]] %s5680_s15 }
   0x8   :  { %20 = vsyncpa [#allocation4], 0  ;;  %s5054_s18 = smov 0  }
   0x9 LB: > { %5691 = sst [smem:[#allocation6_spill]] %s4970_s18  ;;  %s5060_s19 = sadd.s32 4294967295, %s4970_s18   ;;  %s4970_s18 = sphi %s5054_s18, %s26_s18  }
   0xa   : > { %p3900_p0 = scmp.ge.s32.totalorder %s4970_s18, 1  ;;  %p529_p1 = scmp.lt.s32.totalorder %s4970_s18, 4 }
   0xc   : > { %p530_p2 = pnand %p3900_p0, %p529_p1 }
   0xd   : > { %p613_p3 = scmp.lt.s32.totalorder (!%p530_p2), %s5060_s19, 2  ;;  %s5692_s3 = sld [smem:[#allocation10_spill]] (!%p530_p2) }
   0xe   : > { %533 = sbr.rel (%p530_p2) target bundleno = 3396 (0xd44), region = 80  ;;  %s5693_s1 = sld [smem:[#allocation8_spill]] (!%p530_p2) }
   0xf   : > { %s5694_s2 = sld [smem:[#allocation9_spill]] (!%p530_p2)  ;;  %p3909_p4 = scmp.ne.s32.totalorder (!%p530_p2), %s5060_s19, 0 }
  0x13   : > { %s5066_s20 = scalar_select %p613_p3, %s5060_s19, 2 }
  0x15   : > { %s4853_s21 = smul.u32 384, %s5066_s20  ;;  %s4686_s22 = sshll.u32 %s5066_s20, 5 }
  0x16   : > { %s4854_s23 = smul.u32 12, %s5066_s20  ;;  %s5074_s26 = scalar_lea.vmem %s5692_s3, %s4686_s22 }
  0x17   : > { %s5079_s29 = scalar_lea.vmem %s5693_s1, %s4853_s21  ;;  %s4687_s27 = sshll.u32 %s5066_s20, 8 }
  0x18   : > { %s5088_s14 = scalar_lea.vmem %s5694_s2, %s4854_s23  ;;  %s5102_s1 = scalar_lea.vmem %s5672_s7, %s4687_s27 }
  0x19   : > { %s3906_s30 = sshll.u32 %s5066_s20, 4  ;;  %s4688_s18 = sshll.u32 %s5066_s20, 10 }
  0x1a   : > { %s5108_s15 = scalar_lea.vmem %s5673_s8, %s3906_s30  ;;  %s5114_s13 = scalar_lea.vmem %s5674_s9, %s4688_s18 }
  0x1b   : > { %s652_s3 = scalar_lea.vmem %s5675_s10, %s5066_s20  ;;  %s655_s27 = scalar_lea.vmem %s5676_s11, %s5066_s20 }
  0x1c   : > { %s658_s17 = scalar_lea.vmem %s5677_s12, %s5066_s20  ;;  %663 = sbr.rel (%p3909_p4) target bundleno = 38 (0x26), region = 84 }
  0x1d   : > { %s5695_s23 = sld [smem:[#allocation7_spill]] (!%p3909_p4) }
  0x21   : > { %vm666_vm0 = vcmask 261120  }
  0x23   : > { %v664_v0 = vld [vmem:[%s5695_s23] sm:$0xff]  ;;  %v665_v1 = vld [vmem:[%s5695_s23 + $0x8] sm:$0xff] }
  0x24   : > { %667 = vst.msk [vmem:[#allocation2] sm:$0xff] %vm666_vm0, %v664_v0 }
  0x25   : > { %668 = vst.msk [vmem:[#allocation2 + $0x8] sm:$0xff] %vm666_vm0, %v665_v1 }
  0x26 PF: > { %v3915_v2 = vld [vmem:[%s5079_s29 + $0x98] sm:$0xff]  ;;  %v3914_v3 = vld [vmem:[%s5079_s29 + $0x90] sm:$0xff]  ;;  %v3913_v6 = vld [vmem:[%s5079_s29 + $0x88] sm:$0xff]  ;;  %vm679_vm1 = vcmask 261120   ;;  %vm775_vm2 = vcmask 64512   ;;  %s5697_s22 = scalar_lea.vmem %s5670_s5, %s5066_s20  ;;  %s5698_s28 = scalar_lea.vmem %s5671_s6, %s5066_s20 }
  0x27   : > { %v674_v4 = vld [vmem:[%s5079_s29 + $0x18] sm:$0xff]  ;;  %731 = vmatpush.msra.mxu1 %v3915_v2  ;;  %4849 = vmatpush.msra.mxu2 %v3915_v2  ;;  %v673_v5 = vld [vmem:[%s5079_s29 + $0x10] sm:$0xff]  ;;  %v3912_v7 = vld [vmem:[%s5079_s29 + $0x80] sm:$0xff]  ;;  %p4680_p5 = scmp.ne.s32.totalorder %s5060_s19, 2 }
  0x28   : > { %698 = vmatpush.msra.mxu0 %v674_v4  ;;  %v672_v8 = vld [vmem:[%s5079_s29 + $0x8] sm:$0xff]  ;;  %v671_v10 = vld [vmem:[%s5079_s29] sm:$0xff]  ;;  %v3922_v28 = vld [vmem:[%s5079_s29 + $0x118] sm:$0xff]  ;;  %s5700_s25 = sld [smem:[#allocation12_spill]] (!%p4680_p5) }
  0x29   : > { %732 = vmatpush.msra.mxu1 %v3914_v3  ;;  %4850 = vmatpush.msra.mxu2 %v3914_v3  ;;  %v4871_v12 = vld [vmem:[%s5088_s14 + $0x4] ss:$0 sm:$0xff]  ;;  %v4872_v13 = vld [vmem:[%s5088_s14] ss:$0 sm:$0xff]  ;;  %v3921_v29 = vld [vmem:[%s5079_s29 + $0x110] sm:$0xff] }
  0x2a   : > { %699 = vmatpush.msra.mxu0 %v673_v5  ;;  %v3920_v30 = vld [vmem:[%s5079_s29 + $0x108] sm:$0xff]  ;;  %v3919_v31 = vld [vmem:[%s5079_s29 + $0x100] sm:$0xff]  ;;  %v3942_v32 = vld [vmem:[%s5079_s29 + $0xb8] sm:$0xff] }
  0x2b   : > { %v5142_v9 = vld [vmem:[#allocation2] sm:$0xff]  ;;  %733 = vmatpush.msra.mxu1 %v3913_v6  ;;  %4851 = vmatpush.msra.mxu2 %v3913_v6  ;;  %v3941_v33 = vld [vmem:[%s5079_s29 + $0xb0] sm:$0xff]  ;;  %v3940_v34 = vld [vmem:[%s5079_s29 + $0xa8] sm:$0xff] }
  0x2c   : > { %v5145_v11 = vld [vmem:[#allocation2 + $0x8] sm:$0xff]  ;;  %700 = vmatpush.msra.mxu0 %v672_v8  ;;  %v3935_v35 = vld [vmem:[%s5079_s29 + $0x38] sm:$0xff]  ;;  %v3934_v36 = vld [vmem:[%s5079_s29 + $0x30] sm:$0xff] }
  0x2d   : > { %734 = vmatpush.msra.mxu1 %v3912_v7  ;;  %4852 = vmatpush.msra.mxu2 %v3912_v7  ;;  %v3939_v37 = vld [vmem:[%s5079_s29 + $0xa0] sm:$0xff]  ;;  %v3933_v38 = vld [vmem:[%s5079_s29 + $0x28] sm:$0xff] }
  0x2e   : > { %3917 = vmatmul.msk.f32.vlgmr.msra.gmra.mxu1 %vm679_vm1, %v5142_v9  ;;  %701 = vmatpush.msra.mxu0 %v671_v10  ;;  %v3932_v39 = vld [vmem:[%s5079_s29 + $0x20] sm:$0xff]  ;;  %v4873_v50 = vld [vmem:[%s5088_s14 + $0x8] ss:$0 sm:$0xff] }
  0x2f   : > { %3918 = vmatmul.msk.f32.vlgmr.msra.gmra.mxu2 %vm679_vm1, %v5145_v11  ;;  %3910 = vmatmul.msk.f32.vlgmr.msra.gmra.mxu0 %vm679_vm1, %v5142_v9  ;;  %v4874_v55 = vld [vmem:[%s5088_s14 + $0x5] ss:$0 sm:$0xff] }
  0x30   : > { %764 = vmatpush.msrb.mxu2 %v3922_v28  ;;  %947 = vmatpush.msrb.mxu1 %v3935_v35 }
  0x32   : > { %765 = vmatpush.msrb.mxu2 %v3921_v29  ;;  %948 = vmatpush.msrb.mxu1 %v3934_v36  ;;  %v3949_v36 = vld [vmem:[%s5079_s29 + $0x138] sm:$0xff] }
  0x34   : > { %766 = vmatpush.msrb.mxu2 %v3920_v30  ;;  %949 = vmatpush.msrb.mxu1 %v3933_v38  ;;  %v3947_v38 = vld [vmem:[%s5079_s29 + $0x128] sm:$0xff] }
  0x36   : > { %767 = vmatpush.msrb.mxu2 %v3919_v31  ;;  %950 = vmatpush.msrb.mxu1 %v3932_v39  ;;  %v3946_v39 = vld [vmem:[%s5079_s29 + $0x120] sm:$0xff] }
  0x37   : > { %3911 = vmatmul.msk.f32.gmra.mxu0 %vm679_vm1, %v5145_v11  ;;  %3924 = vmatmul.msk.f32.vlgmr.msrb.gmra.mxu2 %vm679_vm1, %v5142_v9 }
  0x38   : > { %980 = vmatpush.msra.mxu2 %v3942_v32  ;;  %3937 = vmatmul.msk.f32.vlgmr.msrb.gmra.mxu1 %vm679_vm1, %v5142_v9 }
  0x3a   : > { %981 = vmatpush.msra.mxu2 %v3941_v33 }
  0x3c   : > { %982 = vmatpush.msra.mxu2 %v3940_v34 }
  0x3e   : > { %983 = vmatpush.msra.mxu2 %v3939_v37  ;;  %v3948_v37 = vld [vmem:[%s5079_s29 + $0x130] sm:$0xff] }
  0x3f   : > { %3925 = vmatmul.msk.f32.gmra.mxu2 %vm679_vm1, %v5145_v11 }
  0x40   : > { %3938 = vmatmul.msk.f32.gmra.mxu1 %vm679_vm1, %v5145_v11 }
  0x47   : > { %3944 = vmatmul.msk.f32.vlgmr.msra.gmra.mxu2 %vm679_vm1, %v5142_v9 }
  0x4f   : > { %3945 = vmatmul.msk.f32.gmra.mxu2 %vm679_vm1, %v5145_v11 }
  0xab   : > { %v736_v14 = vpop.f32.mrf.mxu1 }
  0xac   : > { %v737_v15 = vadd.f32 %v4871_v12, %v736_v14  ;;  %v703_v16 = vpop.f32.mrf.mxu0 }
  0xad   : > { %v704_v17 = vadd.f32 %v4872_v13, %v703_v16 }
  0xae   : > { %3926 = vmatpush.xpose.msk.msra.mxu3 %vm775_vm2, %v737_v15 }
  0xb1   : > { %3927 = vmatmul.msk.f32.vlgmr.msra.gmra.mxu3 %vm775_vm2, %v704_v17 }
  0xb2   : > { %v739_v18 = vpop.f32.mrf.mxu2 }
  0xb3   : > { %v740_v19 = vadd.f32 %v4871_v12, %v739_v18 }
  0xb4   : > { %v706_v20 = vpop.f32.mrf.mxu0 }
  0xb5   : > { %v707_v21 = vadd.f32 %v4872_v13, %v706_v20  ;;  %3928 = vmatpush.xpose.msk.msrb.mxu3 %vm775_vm2, %v740_v19 }
  0xb9   : > { %3929 = vmatmul.msk.f32.vlgmr.msrb.gmra.mxu3 %vm775_vm2, %v707_v21 }
  0xba   : > { %v769_v51 = vpop.f32.mrf.mxu2 }
  0xbb   : > { %v770_v52 = vadd.f32 %v4873_v50, %v769_v51 }
  0xbd   : > { %896 = vmatpush.msra.mxu3 %v770_v52 }
  0xbf   : > { %1013 = vmatpush.msrb.mxu3 %v3949_v36 }
  0xc1   : > { %1014 = vmatpush.msrb.mxu3 %v3948_v37 }
  0xc2   : > { %v772_v53 = vpop.f32.mrf.mxu2 }
  0xc3   : > { %v773_v54 = vadd.f32 %v4873_v50, %v772_v53  ;;  %1015 = vmatpush.msrb.mxu3 %v3947_v38  ;;  %v4876_v50 = vld [vmem:[%s5088_s14 + $0x9] ss:$0 sm:$0xff] }
  0xc5   : > { %919 = vmatpush.msrb.mxu0 %v773_v54  ;;  %1016 = vmatpush.msrb.mxu3 %v3946_v39 }
  0xca   : > { %v985_v56 = vpop.f32.mrf.mxu2 }
  0xcb   : > { %v986_v57 = vadd.f32 %v4874_v55, %v985_v56  ;;  %v3973_v56 = vld [vmem:[%s5079_s29 + $0xd0] sm:$0xff] }
  0xcd   : > { %3953 = vmatpush.xpose.msk.msra.mxu0 %vm775_vm2, %v986_v57  ;;  %v3972_v57 = vld [vmem:[%s5079_s29 + $0xc8] sm:$0xff] }
  0xd2   : > { %v988_v16 = vpop.f32.mrf.mxu2 }
  0xd3   : > { %v989_v20 = vadd.f32 %v4874_v55, %v988_v16  ;;  %v3974_v55 = vld [vmem:[%s5079_s29 + $0xd8] sm:$0xff] }
 0x134   : > { %v799_v22 = vpop.f32.mrf.mxu3 }
 0x135   : > { %v828_v23 = vmul.f32 0.35355338, %v799_v22  ;;  %v952_v22 = vpop.f32.mrf.mxu1 }
 0x137   : > { %v830_v24 = vsel %vm775_vm2, %v828_v23, -inf }
 0x138   : > { %831 = vmax.xlane.f32.xlu1 %v830_v24 }
 0x13c   : > { %v825_v25 = vpop.f32.mrf.mxu3 }
 0x13d   : > { %v829_v26 = vmul.f32 0.35355338, %v825_v25  ;;  %v955_v25 = vpop.f32.mrf.mxu1 }
 0x13f   : > { %v833_v27 = vsel %vm775_vm2, %v829_v26, -inf }
 0x140   : > { %834 = vmax.xlane.f32.xlu0 %v833_v27  ;;  %v924_v27 = vld [vmem:[%s5074_s26] sm:$0xff] }
 0x1ab   : > { %v832_v40 = vpop.xlane.xlu1 %831 }
 0x1ac   : > { %v836_v41 = vsub.f32 %v828_v23, %v832_v40  ;;  %v4875_v23 = vld [vmem:[%s5088_s14 + $0x1] ss:$0 sm:$0xff] }
 0x1ad   : > { %v953_v24 = vadd.f32 %v4875_v23, %v952_v22 }
 0x1ae   : > { %v838_v42 = vmul.f32 1.442695, %v836_v41 }
 0x1b0   : > { %4889 = vpow2.f32 %v838_v42 }
 0x1b3   : > { %v835_v43 = vpop.xlane.xlu0 %834 }
 0x1b4   : > { %v837_v44 = vsub.f32 %v829_v26, %v835_v43  ;;  %v956_v26 = vadd.f32 %v4875_v23, %v955_v25  ;;  %v3959_v25 = vld [vmem:[%s5074_s26 + $0x8] sm:$0xff] }
 0x1b6   : > { %v4890_v45 = vpop.eup %4889  ;;  %v840_v46 = vmul.f32 1.442695, %v837_v44 }
 0x1b7   : > { %v842_v47 = vsel %vm775_vm2, %v4890_v45, 0.0 }
 0x1b8   : > { %4891 = vpow2.f32 %v840_v46  ;;  %843 = vadd.xlane.f32.xlu1 %v842_v47 }
 0x1be   : > { %v4892_v48 = vpop.eup %4891 }
 0x1bf   : > { %v845_v49 = vsel %vm775_vm2, %v4892_v48, 0.0 }
 0x1c0   : > { %846 = vadd.xlane.f32.xlu0 %v845_v49 }
 0x22b   : > { %v844_v58 = vpop.xlane.xlu1 %843 }
 0x22c   : > { %4893 = vrcp.f32 %v844_v58  ;;  %v859_v63 = vand.u32 2147483648, %v844_v58  ;;  %v857_v1 = vand.u32 2147483647, %v844_v58  ;;  %vm853_vm4 = vweird.f32 %v844_v58 }
 0x22e   : > { %v860_v4 = vor.u32 1.1754944e-38, %v859_v63  ;;  %vm858_vm6 = vcmp.eq.f32.partialorder %v857_v1, 8.507059e+37  ;;  %v3964_v63 = vld [vmem:[%s5079_s29 + $0x40] sm:$0xff] }
 0x232   : > { %v4894_v59 = vpop.eup %4893 }
 0x233   : > { %v849_v60 = vmul.f32 %v4894_v59, %v844_v58  ;;  %v847_v61 = vpop.xlane.xlu0 %846  ;;  %vm854_vm3 = vweird.f32 %v4894_v59  ;;  %v3971_v58 = vld [vmem:[%s5079_s29 + $0xc0] sm:$0xff] }
 0x234   : > { %4895 = vrcp.f32 %v847_v61  ;;  %vm855_vm5 = vmor %vm853_vm4, %vm854_vm3  ;;  %v874_v12 = vand.u32 2147483648, %v847_v61  ;;  %v872_v14 = vand.u32 2147483647, %v847_v61  ;;  %vm868_vm8 = vweird.f32 %v847_v61 }
 0x235   : > { %v850_v62 = vsub.f32 1.0, %v849_v60  ;;  %v3966_v60 = vld [vmem:[%s5079_s29 + $0x50] sm:$0xff] }
 0x236   : > { %v875_v17 = vor.u32 1.1754944e-38, %v874_v12  ;;  %vm873_vm10 = vcmp.eq.f32.partialorder %v872_v14, 8.507059e+37 }
 0x237   : > { %v851_v0 = vmul.f32 %v4894_v59, %v850_v62 }
 0x239   : > { %v852_v2 = vadd.f32 %v4894_v59, %v851_v0 }
 0x23a   : > { %v4896_v3 = vpop.eup %4895 }
 0x23b   : > { %v856_v5 = vsel %vm855_vm5, %v4894_v59, %v852_v2  ;;  %v864_v6 = vmul.f32 %v4896_v3, %v847_v61  ;;  %vm869_vm7 = vweird.f32 %v4896_v3  ;;  %v3967_v59 = vld [vmem:[%s5079_s29 + $0x58] sm:$0xff]  ;;  %v3965_v61 = vld [vmem:[%s5079_s29 + $0x48] sm:$0xff] }
 0x23c   : > { %v861_v7 = vsel %vm858_vm6, %v860_v4, %v856_v5  ;;  %vm870_vm9 = vmor %vm868_vm8, %vm869_vm7 }
 0x23d   : > { %v865_v8 = vsub.f32 1.0, %v864_v6  ;;  %v862_v10 = vmul.f32 %v4890_v45, %v861_v7 }
 0x23f   : > { %v866_v13 = vmul.f32 %v4896_v3, %v865_v8  ;;  %3930 = vmatmul.msk.f32.vlgmr.msra.gmra.mxu3 %vm775_vm2, %v862_v10 }
 0x240   : > { %1195 = vmatpush.msra.mxu3 %v3959_v25 }
 0x241   : > { %v867_v15 = vadd.f32 %v4896_v3, %v866_v13 }
 0x243   : > { %v871_v18 = vsel %vm870_vm9, %v4896_v3, %v867_v15 }
 0x244   : > { %v876_v19 = vsel %vm873_vm10, %v875_v17, %v871_v18 }
 0x245   : > { %v877_v21 = vmul.f32 %v4892_v48, %v876_v19 }
 0x247   : > { %3931 = vmatmul.msk.f32.vlgmr.msrb.gmra.mxu0 %vm775_vm2, %v877_v21  ;;  %3951 = vmatmul.msk.f32.vlgmr.msrb.gmra.mxu3 %vm679_vm1, %v5142_v9 }
 0x248   : > { %3955 = vmatpush.xpose.msk.msrb.mxu0 %vm775_vm2, %v989_v20 }
 0x24f   : > { %3954 = vmatmul.msk.f32.vlgmr.msra.gmra.mxu0 %vm775_vm2, %v953_v24  ;;  %3952 = vmatmul.msk.f32.gmra.mxu3 %vm679_vm1, %v5145_v11 }
 0x250   : > { %1224 = vmatpush.msra.mxu0 %v924_v27 }
 0x257   : > { %3956 = vmatmul.msk.f32.vlgmr.msrb.gmra.mxu0 %vm775_vm2, %v956_v26 }
 0x2c2   : > { %v898_v28 = vpop.f32.mrf.mxu3 }
 0x2c3   : > { %3962 = vmatmul.msk.f32.vlgmr.msra.gmra.mxu0 %vm775_vm2, %v898_v28  ;;  %v4877_v28 = vld [vmem:[%s5088_s14 + $0x6] ss:$0 sm:$0xff] }
 0x2c4   : > { %v921_v29 = vpop.f32.mrf.mxu0 }
 0x2ca   : > { %v1018_v51 = vpop.f32.mrf.mxu3 }
 0x2cb   : > { %3963 = vmatmul.msk.f32.gmra.mxu0 %vm775_vm2, %v921_v29  ;;  %v1019_v52 = vadd.f32 %v4876_v50, %v1018_v51  ;;  %v4878_v29 = vld [vmem:[%s5088_s14 + $0x2] ss:$0 sm:$0xff] }
 0x2cc   : > { %v1047_v30 = vpop.f32.mrf.mxu0 }
 0x2cd   : > { %v1076_v34 = vmul.f32 0.35355338, %v1047_v30  ;;  %1144 = vmatpush.msra.mxu1 %v1019_v52 }
 0x2cf   : > { %v1078_v35 = vsel %vm775_vm2, %v1076_v34, -inf  ;;  %1254 = vmatpush.msrb.mxu1 %v3967_v59 }
 0x2d1   : > { %1255 = vmatpush.msrb.mxu1 %v3966_v60 }
 0x2d2   : > { %v1021_v53 = vpop.f32.mrf.mxu3 }
 0x2d3   : > { %v1022_v54 = vadd.f32 %v4876_v50, %v1021_v53  ;;  %1256 = vmatpush.msrb.mxu1 %v3965_v61 }
 0x2d4   : > { %v1073_v31 = vpop.f32.mrf.mxu0 }
 0x2d5   : > { %v1077_v32 = vmul.f32 0.35355338, %v1073_v31  ;;  %1167 = vmatpush.msrb.mxu2 %v1022_v54  ;;  %1257 = vmatpush.msrb.mxu1 %v3964_v63 }
 0x2d7   : > { %v1081_v33 = vsel %vm775_vm2, %v1077_v32, -inf  ;;  %1287 = vmatpush.msra.mxu2 %v3974_v55 }
 0x2d8   : > { %1082 = vmax.xlane.f32.xlu2 %v1081_v33 }
 0x2d9   : > { %1288 = vmatpush.msra.mxu2 %v3973_v56 }
 0x2db   : > { %1289 = vmatpush.msra.mxu2 %v3972_v57 }
 0x2dd   : > { %1290 = vmatpush.msra.mxu2 %v3971_v58 }
 0x2e0   : > { %1079 = vmax.xlane.f32.xlu2 %v1078_v35 }
 0x340   : > { %v5241_v38 = vpop.f32.mrf.mxu0 }
 0x348   : > { %v5243_v39 = vpop.f32.mrf.mxu0 }
 0x34b   : > { %v1083_v40 = vpop.xlane.xlu2 %1082 }
 0x34c   : > { %v1085_v41 = vsub.f32 %v1077_v32, %v1083_v40 }
 0x34e   : > { %v1088_v42 = vmul.f32 1.442695, %v1085_v41 }
 0x350   : > { %4897 = vpow2.f32 %v1088_v42 }
 0x353   : > { %v1080_v43 = vpop.xlane.xlu2 %1079 }
 0x354   : > { %v1084_v44 = vsub.f32 %v1076_v34, %v1080_v43 }
 0x356   : > { %v4898_v45 = vpop.eup %4897  ;;  %v1086_v46 = vmul.f32 1.442695, %v1084_v44 }
 0x357   : > { %v1093_v47 = vsel %vm775_vm2, %v4898_v45, 0.0 }
 0x358   : > { %4899 = vpow2.f32 %v1086_v46  ;;  %1094 = vadd.xlane.f32.xlu0 %v1093_v47  ;;  %v3981_v46 = vld [vmem:[%s5079_s29 + $0x158] sm:$0xff]  ;;  %v3980_v47 = vld [vmem:[%s5079_s29 + $0x150] sm:$0xff] }
 0x359   : > { %1320 = vmatpush.msrb.mxu3 %v3981_v46 }
 0x35b   : > { %1321 = vmatpush.msrb.mxu3 %v3980_v47 }
 0x35e   : > { %v4900_v48 = vpop.eup %4899 }
 0x35f   : > { %v1090_v49 = vsel %vm775_vm2, %v4900_v48, 0.0 }
 0x360   : > { %1091 = vadd.xlane.f32.xlu1 %v1090_v49  ;;  %v3978_v49 = vld [vmem:[%s5079_s29 + $0x140] sm:$0xff] }
 0x3cb   : > { %v1095_v62 = vpop.xlane.xlu0 %1094 }
 0x3cc   : > { %4901 = vrcp.f32 %v1095_v62  ;;  %v1122_v4 = vand.u32 2147483648, %v1095_v62  ;;  %v1120_v6 = vand.u32 2147483647, %v1095_v62  ;;  %vm1116_vm12 = vweird.f32 %v1095_v62 }
 0x3ce   : > { %v1123_v10 = vor.u32 1.1754944e-38, %v1122_v4  ;;  %vm1121_vm14 = vcmp.eq.f32.partialorder %v1120_v6, 8.507059e+37  ;;  %v4002_v4 = vld [vmem:[%s5079_s29 + $0xe8] sm:$0xff]  ;;  %v4001_v6 = vld [vmem:[%s5079_s29 + $0xe0] sm:$0xff] }
 0x3d2   : > { %v4902_v0 = vpop.eup %4901 }
 0x3d3   : > { %v1112_v1 = vmul.f32 %v4902_v0, %v1095_v62  ;;  %v1092_v2 = vpop.xlane.xlu1 %1091  ;;  %vm1117_vm11 = vweird.f32 %v4902_v0  ;;  %v4879_v62 = vld [vmem:[%s5088_s14 + $0xa] ss:$0 sm:$0xff] }
 0x3d4   : > { %4903 = vrcp.f32 %v1092_v2  ;;  %vm1118_vm13 = vmor %vm1116_vm12, %vm1117_vm11  ;;  %v1107_v17 = vand.u32 2147483648, %v1092_v2  ;;  %v1105_v19 = vand.u32 2147483647, %v1092_v2  ;;  %vm1101_vm0 = vweird.f32 %v1092_v2 }
 0x3d5   : > { %v1113_v3 = vsub.f32 1.0, %v1112_v1  ;;  %v4004_v1 = vld [vmem:[%s5079_s29 + $0xf8] sm:$0xff] }
 0x3d6   : > { %v1108_v21 = vor.u32 1.1754944e-38, %v1107_v17  ;;  %vm1106_vm4 = vcmp.eq.f32.partialorder %v1105_v19, 8.507059e+37 }
 0x3d7   : > { %v1114_v5 = vmul.f32 %v4902_v0, %v1113_v3  ;;  %v3997_v3 = vld [vmem:[%s5079_s29 + $0x78] sm:$0xff] }
 0x3d9   : > { %v1115_v7 = vadd.f32 %v4902_v0, %v1114_v5  ;;  %v3996_v5 = vld [vmem:[%s5079_s29 + $0x70] sm:$0xff] }
 0x3da   : > { %v4904_v8 = vpop.eup %4903 }
 0x3db   : > { %v1119_v12 = vsel %vm1118_vm13, %v4902_v0, %v1115_v7  ;;  %v1097_v13 = vmul.f32 %v4904_v8, %v1092_v2  ;;  %vm1102_vm15 = vweird.f32 %v4904_v8  ;;  %v4003_v2 = vld [vmem:[%s5079_s29 + $0xf0] sm:$0xff] }
 0x3dc   : > { %v1124_v14 = vsel %vm1121_vm14, %v1123_v10, %v1119_v12  ;;  %vm1103_vm3 = vmor %vm1101_vm0, %vm1102_vm15  ;;  %v3994_v12 = vld [vmem:[%s5079_s29 + $0x60] sm:$0xff] }
 0x3dd   : > { %v1098_v15 = vsub.f32 1.0, %v1097_v13  ;;  %v1125_v16 = vmul.f32 %v4898_v45, %v1124_v14 }
 0x3df   : > { %v1099_v18 = vmul.f32 %v4904_v8, %v1098_v15  ;;  %3958 = vmatmul.msk.f32.vlgmr.msrb.gmra.mxu2 %vm775_vm2, %v1125_v16 }
 0x3e1   : > { %v1100_v20 = vadd.f32 %v4904_v8, %v1099_v18 }
 0x3e3   : > { %v1104_v22 = vsel %vm1103_vm3, %v4904_v8, %v1100_v20  ;;  %v3995_v8 = vld [vmem:[%s5079_s29 + $0x68] sm:$0xff] }
 0x3e4   : > { %v1109_v23 = vsel %vm1106_vm4, %v1108_v21, %v1104_v22 }
 0x3e5   : > { %v1110_v24 = vmul.f32 %v4900_v48, %v1109_v23  ;;  %v3979_v48 = vld [vmem:[%s5079_s29 + $0x148] sm:$0xff] }
 0x3e6   : > { %1322 = vmatpush.msrb.mxu3 %v3979_v48  ;;  %v4881_v48 = vld [vmem:[%s5088_s14 + $0x3] ss:$0 sm:$0xff] }
 0x3e7   : > { %3957 = vmatmul.msk.f32.vlgmr.msra.gmra.mxu1 %vm775_vm2, %v1110_v24  ;;  %3976 = vmatmul.msk.f32.vlgmr.msra.gmra.mxu2 %vm679_vm1, %v5142_v9 }
 0x3e8   : > { %1323 = vmatpush.msrb.mxu3 %v3978_v49 }
 0x3ef   : > { %3977 = vmatmul.msk.f32.gmra.mxu2 %vm679_vm1, %v5145_v11  ;;  %3969 = vmatmul.msk.f32.vlgmr.msrb.gmra.mxu1 %vm679_vm1, %v5142_v9 }
 0x3f7   : > { %3970 = vmatmul.msk.f32.gmra.mxu1 %vm679_vm1, %v5145_v11 }
 0x462   : > { %v1169_v26 = vpop.f32.mrf.mxu2 }
 0x464   : > { %v1146_v27 = vpop.f32.mrf.mxu1 }
 0x465   : > { %3960 = vmatmul.msk.f32.vlgmr.msra.gmra.mxu3 %vm775_vm2, %v1146_v27 }
 0x466   : > { %1567 = vmatpush.msra.mxu3 %v4004_v1  ;;  %v4010_v1 = vld [vmem:[%s5079_s29 + $0x170] sm:$0xff] }
 0x468   : > { %1568 = vmatpush.msra.mxu3 %v4003_v2  ;;  %v4009_v2 = vld [vmem:[%s5079_s29 + $0x168] sm:$0xff] }
 0x46a   : > { %v1292_v30 = vpop.f32.mrf.mxu2  ;;  %1569 = vmatpush.msra.mxu3 %v4002_v4 }
 0x46b   : > { %v1293_v31 = vadd.f32 %v4877_v28, %v1292_v30 }
 0x46c   : > { %v1259_v32 = vpop.f32.mrf.mxu1  ;;  %1570 = vmatpush.msra.mxu3 %v4001_v6 }
 0x46d   : > { %3961 = vmatmul.msk.f32.gmra.mxu3 %vm775_vm2, %v1169_v26  ;;  %v1260_v33 = vadd.f32 %v4878_v29, %v1259_v32  ;;  %3985 = vmatpush.xpose.msk.msrb.mxu0 %vm775_vm2, %v1293_v31 }
 0x470   : > { %3986 = vmatmul.msk.f32.vlgmr.msrb.gmra.mxu0 %vm775_vm2, %v1260_v33 }
 0x472   : > { %v1295_v34 = vpop.f32.mrf.mxu2 }
 0x473   : > { %v1296_v35 = vadd.f32 %v4877_v28, %v1295_v34 }
 0x474   : > { %v1262_v36 = vpop.f32.mrf.mxu1 }
 0x475   : > { %v1263_v37 = vadd.f32 %v4878_v29, %v1262_v36  ;;  %3987 = vmatpush.xpose.msk.msra.mxu1 %vm775_vm2, %v1296_v35  ;;  %3983 = vmatmul.msk.f32.vlgmr.msrb.gmra.mxu3 %vm679_vm1, %v5142_v9 }
 0x478   : > { %3988 = vmatmul.msk.f32.vlgmr.msra.gmra.mxu1 %vm775_vm2, %v1263_v37  ;;  %v3991_v37 = vld [vmem:[%s5074_s26 + $0x10] sm:$0xff] }
 0x479   : > { %1502 = vmatpush.msrb.mxu1 %v3991_v37 }
 0x47d   : > { %3984 = vmatmul.msk.f32.gmra.mxu3 %vm679_vm1, %v5145_v11 }
 0x485   : > { %4006 = vmatmul.msk.f32.vlgmr.msra.gmra.mxu3 %vm679_vm1, %v5142_v9 }
 0x48d   : > { %4007 = vmatmul.msk.f32.gmra.mxu3 %vm679_vm1, %v5145_v11 }
 0x4e8   : > { %v5260_v60 = vpop.f32.mrf.mxu3 }
 0x4ed   : > { %v1354_v40 = vpop.f32.mrf.mxu0 }
 0x4ee   : > { %v1383_v41 = vmul.f32 0.35355338, %v1354_v40  ;;  %v4880_v40 = vld [vmem:[%s5088_s14 + $0x7] ss:$0 sm:$0xff] }
 0x4f0   : > { %v1385_v42 = vsel %vm775_vm2, %v1383_v41, -inf  ;;  %v5262_v61 = vpop.f32.mrf.mxu3 }
 0x4f1   : > { %1386 = vmax.xlane.f32.xlu2 %v1385_v42 }
 0x4f5   : > { %v1380_v43 = vpop.f32.mrf.mxu1 }
 0x4f6   : > { %v1384_v44 = vmul.f32 0.35355338, %v1380_v43 }
 0x4f8   : > { %v1388_v45 = vsel %vm775_vm2, %v1384_v44, -inf  ;;  %v1325_v63 = vpop.f32.mrf.mxu3 }
 0x4f9   : > { %1389 = vmax.xlane.f32.xlu0 %v1388_v45  ;;  %v1326_v0 = vadd.f32 %v4879_v62, %v1325_v63 }
 0x4fb   : > { %1451 = vmatpush.msrb.mxu2 %v1326_v0 }
 0x4fd   : > { %1534 = vmatpush.msra.mxu2 %v3997_v3 }
 0x4ff   : > { %1535 = vmatpush.msra.mxu2 %v3996_v5 }
 0x500   : > { %v1328_v7 = vpop.f32.mrf.mxu3 }
 0x501   : > { %v1329_v10 = vadd.f32 %v4879_v62, %v1328_v7  ;;  %1536 = vmatpush.msra.mxu2 %v3995_v8 }
 0x503   : > { %1474 = vmatpush.msra.mxu0 %v1329_v10  ;;  %1537 = vmatpush.msra.mxu2 %v3994_v12 }
 0x564   : > { %v1387_v50 = vpop.xlane.xlu2 %1386 }
 0x565   : > { %v1391_v51 = vsub.f32 %v1383_v41, %v1387_v50  ;;  %v1572_v41 = vpop.f32.mrf.mxu3 }
 0x566   : > { %v1573_v42 = vadd.f32 %v4880_v40, %v1572_v41 }
 0x567   : > { %v1393_v52 = vmul.f32 1.442695, %v1391_v51 }
 0x568   : > { %4015 = vmatpush.xpose.msk.msra.mxu1 %vm775_vm2, %v1573_v42 }
 0x569   : > { %4905 = vpow2.f32 %v1393_v52  ;;  %v1227_v52 = vadd.f32 %v5241_v38, %v5260_v60  ;;  %v4011_v60 = vld [vmem:[%s5079_s29 + $0x178] sm:$0xff] }
 0x56a   : > { %1600 = vmatpush.msrb.mxu0 %v4011_v60 }
 0x56c   : > { %v1390_v53 = vpop.xlane.xlu0 %1389  ;;  %1601 = vmatpush.msrb.mxu0 %v4010_v1 }
 0x56d   : > { %v1392_v54 = vsub.f32 %v1384_v44, %v1390_v53  ;;  %v1575_v43 = vpop.f32.mrf.mxu3 }
 0x56e   : > { %v1576_v44 = vadd.f32 %v4880_v40, %v1575_v43  ;;  %1602 = vmatpush.msrb.mxu0 %v4009_v2 }
 0x56f   : > { %v4906_v55 = vpop.eup %4905  ;;  %v1395_v56 = vmul.f32 1.442695, %v1392_v54 }
 0x570   : > { %v1397_v57 = vsel %vm775_vm2, %v4906_v55, 0.0 }
 0x571   : > { %4907 = vpow2.f32 %v1395_v56  ;;  %1398 = vadd.xlane.f32.xlu1 %v1397_v57 }
 0x577   : > { %v5256_v58 = vpop.eup %4907 }
 0x578   : > { %v1400_v59 = vsel %vm775_vm2, %v5256_v58, 0.0 }
 0x579   : > { %1401 = vadd.xlane.f32.xlu2 %v1400_v59 }
 0x5e4   : > { %v1399_v13 = vpop.xlane.xlu1 %1398 }
 0x5e5   : > { %4909 = vrcp.f32 %v1399_v13  ;;  %v1414_v18 = vand.u32 2147483648, %v1399_v13  ;;  %v1412_v20 = vand.u32 2147483647, %v1399_v13  ;;  %vm1408_vm6 = vweird.f32 %v1399_v13 }
 0x5e7   : > { %v1415_v23 = vor.u32 1.1754944e-38, %v1414_v18  ;;  %vm1413_vm8 = vcmp.eq.f32.partialorder %v1412_v20, 8.507059e+37 }
 0x5eb   : > { %v4910_v14 = vpop.eup %4909 }
 0x5ec   : > { %v1404_v15 = vmul.f32 %v4910_v14, %v1399_v13  ;;  %v1402_v16 = vpop.xlane.xlu2 %1401  ;;  %vm1409_vm5 = vweird.f32 %v4910_v14 }
 0x5ed   : > { %4911 = vrcp.f32 %v1402_v16  ;;  %vm1410_vm7 = vmor %vm1408_vm6, %vm1409_vm5  ;;  %v1429_v29 = vand.u32 2147483648, %v1402_v16  ;;  %v1427_v31 = vand.u32 2147483647, %v1402_v16  ;;  %vm1423_vm10 = vweird.f32 %v1402_v16 }
 0x5ee   : > { %v1405_v17 = vsub.f32 1.0, %v1404_v15 }
 0x5ef   : > { %v1430_v33 = vor.u32 1.1754944e-38, %v1429_v29  ;;  %vm1428_vm12 = vcmp.eq.f32.partialorder %v1427_v31, 8.507059e+37 }
 0x5f0   : > { %v1406_v19 = vmul.f32 %v4910_v14, %v1405_v17 }
 0x5f2   : > { %v1407_v21 = vadd.f32 %v4910_v14, %v1406_v19 }
 0x5f3   : > { %v4912_v22 = vpop.eup %4911 }
 0x5f4   : > { %v1411_v24 = vsel %vm1410_vm7, %v4910_v14, %v1407_v21  ;;  %v1419_v25 = vmul.f32 %v4912_v22, %v1402_v16  ;;  %vm1424_vm9 = vweird.f32 %v4912_v22  ;;  %v4882_v14 = vld [vmem:[%s5088_s14 + $0xb] ss:$0 sm:$0xff] }
 0x5f5   : > { %v1416_v26 = vsel %vm1413_vm8, %v1415_v23, %v1411_v24  ;;  %vm1425_vm11 = vmor %vm1423_vm10, %vm1424_vm9 }
 0x5f6   : > { %v1420_v27 = vsub.f32 1.0, %v1419_v25  ;;  %v1417_v28 = vmul.f32 %v4906_v55, %v1416_v26  ;;  %v1230_v55 = vadd.f32 %v5243_v39, %v5262_v61  ;;  %v4008_v39 = vld [vmem:[%s5079_s29 + $0x160] sm:$0xff]  ;;  %s5696_s29 = scalar_lea.vmem %s5669_s4, %s5066_s20 }
 0x5f7   : > { %1603 = vmatpush.msrb.mxu0 %v4008_v39 }
 0x5f8   : > { %v1421_v30 = vmul.f32 %v4912_v22, %v1420_v27  ;;  %3989 = vmatmul.msk.f32.vlgmr.msrb.gmra.mxu2 %vm775_vm2, %v1417_v28 }
 0x5f9   : > { %4017 = vmatpush.xpose.msk.msrb.mxu2 %vm775_vm2, %v1576_v44 }
 0x5fa   : > { %v1422_v32 = vadd.f32 %v4912_v22, %v1421_v30 }
 0x5fc   : > { %v1426_v34 = vsel %vm1425_vm11, %v4912_v22, %v1422_v32 }
 0x5fd   : > { %v1431_v35 = vsel %vm1428_vm12, %v1430_v33, %v1426_v34 }
 0x5fe   : > { %v1432_v36 = vmul.f32 %v5256_v58, %v1431_v35 }
 0x600   : > { %3990 = vmatmul.msk.f32.vlgmr.msra.gmra.mxu0 %vm775_vm2, %v1432_v36  ;;  %3999 = vmatmul.msk.f32.vlgmr.msra.gmra.mxu2 %vm679_vm1, %v5142_v9 }
 0x608   : > { %4000 = vmatmul.msk.f32.gmra.mxu2 %vm679_vm1, %v5145_v11  ;;  %4013 = vmatmul.msk.f32.vlgmr.msrb.gmra.mxu0 %vm679_vm1, %v5142_v9 }
 0x610   : > { %4014 = vmatmul.msk.f32.gmra.mxu0 %vm679_vm1, %v5145_v11 }
 0x67b   : > { %v1453_v45 = vpop.f32.mrf.mxu2 }
 0x67c   : > { %3992 = vmatmul.msk.f32.vlgmr.msrb.gmra.mxu1 %vm775_vm2, %v1453_v45  ;;  %v4021_v45 = vld [vmem:[%s5074_s26 + $0x18] sm:$0xff] }
 0x67d   : > { %v1476_v46 = vpop.f32.mrf.mxu0  ;;  %1782 = vmatpush.msrb.mxu1 %v4021_v45  ;;  %v4108_v45 = vld [vmem:[%s5102_s1 + $0xd0] sm:$0xf0] }
 0x683   : > { %v1539_v47 = vpop.f32.mrf.mxu2 }
 0x684   : > { %3993 = vmatmul.msk.f32.gmra.mxu1 %vm775_vm2, %v1476_v46  ;;  %v1540_v49 = vadd.f32 %v4881_v48, %v1539_v47 }
 0x685   : > { %v1605_v15 = vpop.f32.mrf.mxu0 }
 0x686   : > { %v1606_v16 = vadd.f32 %v4882_v14, %v1605_v15  ;;  %v4098_v15 = vld [vmem:[%s5102_s1 + $0x88] sm:$0xf] }
 0x688   : > { %1731 = vmatpush.msrb.mxu3 %v1606_v16  ;;  %v4714_v16 = vld [vmem:[%s5102_s1 + $0xc4] sm:$0xf0] }
 0x68b   : > { %v1542_v50 = vpop.f32.mrf.mxu2 }
 0x68c   : > { %v1543_v51 = vadd.f32 %v4881_v48, %v1542_v50  ;;  %4016 = vmatmul.msk.f32.vlgmr.msra.gmra.mxu1 %vm775_vm2, %v1540_v49  ;;  %v4883_v48 = vld [vmem:[%s5696_s29] ss:$0 sm:$0xff] }
 0x68d   : > { %v1608_v17 = vpop.f32.mrf.mxu0 }
 0x68e   : > { %4018 = vmatmul.msk.f32.vlgmr.msrb.gmra.mxu2 %vm775_vm2, %v1543_v51  ;;  %v1609_v18 = vadd.f32 %v4882_v14, %v1608_v17  ;;  %v4092_v14 = vld [vmem:[%s5102_s1 + $0xc0] sm:$0xf0] }
 0x690   : > { %1754 = vmatpush.msra.mxu0 %v1609_v18  ;;  %v4099_v18 = vor.u32 %v4714_v16, %v4098_v15  ;;  %v4884_v15 = vld [vmem:[%s5697_s22] ss:$0 sm:$0xff] }
 0x692   : > { %2129 = vmatpush.bf16.msrb.mxu0 %v4099_v18 }
 0x6f9   : > { %v1504_v53 = vpop.f32.mrf.mxu1 }
 0x6fa   : > { %v5295_v54 = vadd.f32 %v1504_v53, %v1227_v52 }
 0x701   : > { %v1507_v56 = vpop.f32.mrf.mxu1 }
 0x702   : > { %v5299_v57 = vadd.f32 %v1507_v56, %v1230_v55 }
 0x709   : > { %v1634_v58 = vpop.f32.mrf.mxu1 }
 0x70a   : > { %v1663_v59 = vmul.f32 0.35355338, %v1634_v58 }
 0x70c   : > { %v1665_v62 = vsel %vm775_vm2, %v1663_v59, -inf }
 0x70d   : > { %1666 = vmax.xlane.f32.xlu0 %v1665_v62 }
 0x711   : > { %v1660_v63 = vpop.f32.mrf.mxu2 }
 0x712   : > { %v1664_v0 = vmul.f32 0.35355338, %v1660_v63  ;;  %v4972_v63 = vmov 32.0  }
 0x714   : > { %v1668_v38 = vsel %vm775_vm2, %v1664_v0, -inf }
 0x715   : > { %1669 = vmax.xlane.f32.xlu1 %v1668_v38 }
 0x780   : > { %v1667_v61 = vpop.xlane.xlu0 %1666 }
 0x781   : > { %v1671_v3 = vsub.f32 %v1663_v59, %v1667_v61 }
 0x783   : > { %v1673_v4 = vmul.f32 1.442695, %v1671_v3 }
 0x785   : > { %4913 = vpow2.f32 %v1673_v4 }
 0x788   : > { %v1670_v5 = vpop.xlane.xlu1 %1669 }
 0x789   : > { %v1672_v6 = vsub.f32 %v1664_v0, %v1670_v5 }
 0x78b   : > { %v4914_v7 = vpop.eup %4913  ;;  %v1675_v8 = vmul.f32 1.442695, %v1672_v6 }
 0x78c   : > { %v1677_v10 = vsel %vm775_vm2, %v4914_v7, 0.0 }
 0x78d   : > { %4915 = vpow2.f32 %v1675_v8  ;;  %1678 = vadd.xlane.f32.xlu2 %v1677_v10  ;;  %v4090_v8 = vld [vmem:[%s5102_s1 + $0x80] sm:$0xf] }
 0x78e   : > { %v4713_v10 = vld [vmem:[%s5102_s1 + $0xbc] sm:$0xf0] }
 0x793   : > { %v4916_v12 = vpop.eup %4915 }
 0x794   : > { %v1680_v13 = vsel %vm775_vm2, %v4916_v12, 0.0 }
 0x795   : > { %1681 = vadd.xlane.f32.xlu0 %v1680_v13  ;;  %v4091_v13 = vor.u32 %v4713_v10, %v4090_v8 }
 0x797   : > { %2101 = vmatpush.bf16.msra.mxu2 %v4091_v13 }
 0x800   : > { %v1679_v19 = vpop.xlane.xlu2 %1678 }
 0x801   : > { %4917 = vrcp.f32 %v1679_v19  ;;  %v1694_v24 = vand.u32 2147483648, %v1679_v19  ;;  %v1692_v26 = vand.u32 2147483647, %v1679_v19  ;;  %vm1688_vm14 = vweird.f32 %v1679_v19 }
 0x803   : > { %v1695_v29 = vor.u32 1.1754944e-38, %v1694_v24  ;;  %vm1693_vm0 = vcmp.eq.f32.partialorder %v1692_v26, 8.507059e+37  ;;  %v4026_v24 = vld [vmem:[%s5102_s1] sm:$0xf]  ;;  %v4689_v26 = vld [vmem:[%s5102_s1 + $0x4] sm:$0xf] }
 0x807   : > { %v4918_v20 = vpop.eup %4917 }
 0x808   : > { %v1684_v21 = vmul.f32 %v4918_v20, %v1679_v19  ;;  %v1682_v22 = vpop.xlane.xlu0 %1681  ;;  %vm1689_vm13 = vweird.f32 %v4918_v20  ;;  %v4706_v19 = vld [vmem:[%s5102_s1 + $0x8c] sm:$0xf] }
 0x809   : > { %4919 = vrcp.f32 %v1682_v22  ;;  %vm1690_vm15 = vmor %vm1688_vm14, %vm1689_vm13  ;;  %v1709_v35 = vand.u32 2147483648, %v1682_v22  ;;  %v1707_v37 = vand.u32 2147483647, %v1682_v22  ;;  %vm1703_vm4 = vweird.f32 %v1682_v22 }
 0x80a   : > { %v1685_v23 = vsub.f32 1.0, %v1684_v21  ;;  %4921 = vrcp.f32 %v4972_v63 }
 0x80b   : > { %v1710_v41 = vor.u32 1.1754944e-38, %v1709_v35  ;;  %vm1708_vm6 = vcmp.eq.f32.partialorder %v1707_v37, 8.507059e+37  ;;  %v4036_v35 = vld [vmem:[%s5102_s1 + $0x48] sm:$0xf0] }
 0x80c   : > { %v1686_v25 = vmul.f32 %v4918_v20, %v1685_v23 }
 0x80e   : > { %v1687_v27 = vadd.f32 %v4918_v20, %v1686_v25  ;;  %v4697_v25 = vld [vmem:[%s5102_s1 + $0x3c] sm:$0xf0] }
 0x80f   : > { %v4920_v28 = vpop.eup %4919 }
 0x810   : > { %v1691_v30 = vsel %vm1690_vm15, %v4918_v20, %v1687_v27  ;;  %v1699_v31 = vmul.f32 %v4920_v28, %v1682_v22  ;;  %vm1704_vm3 = vweird.f32 %v4920_v28  ;;  %v4922_v0 = vpop.eup %4921  ;;  %v4100_v20 = vld [vmem:[%s5102_s1 + $0xc8] sm:$0xf0]  ;;  %v4027_v27 = vor.u32 %v4697_v25, %v4026_v24  ;;  %v4709_v24 = vld [vmem:[%s5102_s1 + $0xa4] sm:$0xf] }
 0x811   : > { %v1696_v32 = vsel %vm1693_vm0, %v1695_v29, %v1691_v30  ;;  %vm1705_vm5 = vmor %vm1703_vm4, %vm1704_vm3  ;;  %v1807_v38 = vmul.f32 32.0, %v4922_v0  ;;  %v4103_v22 = vor.u32 %v4706_v19, %v4100_v20  ;;  %v4034_v29 = vld [vmem:[%s5102_s1 + $0x8] sm:$0xf]  ;;  %v4885_v19 = vld [vmem:[%s5698_s28] ss:$0 sm:$0xff] }
 0x812   : > { %v1700_v33 = vsub.f32 1.0, %v1699_v31  ;;  %v1697_v34 = vmul.f32 %v4914_v7, %v1696_v32  ;;  %v4698_v30 = vld [vmem:[%s5102_s1 + $0x44] sm:$0xf0]  ;;  %2102 = vmatpush.bf16.msra.mxu2 %v4027_v27  ;;  %v4124_v25 = vld [vmem:[%s5102_s1 + $0xe0] sm:$0xf0] }
 0x813   : > { %2143 = vmatpush.bf16.msra.mxu1 %v4103_v22 }
 0x814   : > { %v1701_v36 = vmul.f32 %v4920_v28, %v1700_v33  ;;  %4019 = vmatmul.msk.f32.vlgmr.msrb.gmra.mxu3 %vm775_vm2, %v1697_v34  ;;  %v4035_v33 = vor.u32 %v4698_v30, %v4034_v29  ;;  %v4690_v34 = vld [vmem:[%s5102_s1 + $0xc] sm:$0xf]  ;;  %v4718_v29 = vld [vmem:[%s5102_s1 + $0xe4] sm:$0xf0] }
 0x815   : > { %v4710_v30 = vld [vmem:[%s5102_s1 + $0xac] sm:$0xf] }
 0x816   : > { %v1702_v40 = vadd.f32 %v4920_v28, %v1701_v36  ;;  %v4039_v36 = vor.u32 %v4690_v34, %v4036_v35  ;;  %2130 = vmatpush.bf16.msrb.mxu0 %v4035_v33  ;;  %v4127_v33 = vor.u32 %v4709_v24, %v4124_v25  ;;  %v4058_v34 = vld [vmem:[%s5102_s1 + $0x20] sm:$0xf] }
 0x817   : > { %v4701_v35 = vld [vmem:[%s5102_s1 + $0x5c] sm:$0xf0] }
 0x818   : > { %v1706_v42 = vsel %vm1705_vm5, %v4920_v28, %v1702_v40  ;;  %v4028_v28 = vld [vmem:[%s5102_s1 + $0x40] sm:$0xf0]  ;;  %2144 = vmatpush.bf16.msra.mxu1 %v4039_v36  ;;  %v4106_v40 = vld [vmem:[%s5102_s1 + $0x90] sm:$0xf] }
 0x819   : > { %v1711_v43 = vsel %vm1708_vm6, %v1710_v41, %v1706_v42  ;;  %v4031_v32 = vor.u32 %v4689_v26, %v4028_v28  ;;  %v4715_v41 = vld [vmem:[%s5102_s1 + $0xcc] sm:$0xf0]  ;;  %v4707_v42 = vld [vmem:[%s5102_s1 + $0x94] sm:$0xf]  ;;  %v4130_v26 = vld [vmem:[%s5102_s1 + $0xa8] sm:$0xf] }
 0x81a   : > { %v1712_v44 = vmul.f32 %v4916_v12, %v1711_v43  ;;  %v4705_v12 = vld [vmem:[%s5102_s1 + $0x84] sm:$0xf]  ;;  %v4131_v36 = vor.u32 %v4718_v29, %v4130_v26  ;;  %v4740_v26 = vld [vmem:[%s5114_s13 + $0x98] sm:$0xff] }
 0x81b   : > { %v4095_v17 = vor.u32 %v4705_v12, %v4092_v14  ;;  %v4725_v24 = vld [vmem:[%s5114_s13 + $0x20] sm:$0xff]  ;;  %v4748_v29 = vld [vmem:[%s5114_s13 + $0xd8] sm:$0xff] }
 0x81c   : > { %4020 = vmatmul.msk.f32.vlgmr.msra.gmra.mxu0 %vm775_vm2, %v1712_v44  ;;  %v4107_v44 = vor.u32 %v4715_v41, %v4106_v40  ;;  %v4693_v40 = vld [vmem:[%s5102_s1 + $0x24] sm:$0xf] }
 0x81d   : > { %2115 = vmatpush.bf16.msra.mxu3 %v4095_v17  ;;  %v4060_v41 = vld [vmem:[%s5102_s1 + $0x60] sm:$0xf0] }
 0x81e   : > { %2157 = vmatpush.bf16.msrb.mxu2 %v4107_v44  ;;  %v4694_v44 = vld [vmem:[%s5102_s1 + $0x2c] sm:$0xf]  ;;  %v4733_v25 = vld [vmem:[%s5114_s13 + $0x60] sm:$0xff] }
 0x821   : > { %2116 = vmatpush.bf16.msra.mxu3 %v4031_v32 }
 0x897   : > { %v1733_v46 = vpop.f32.mrf.mxu3 }
 0x898   : > { %4022 = vmatmul.msk.f32.vlgmr.msrb.gmra.mxu1 %vm775_vm2, %v1733_v46  ;;  %v4114_v46 = vld [vmem:[%s5102_s1 + $0x98] sm:$0xf] }
 0x899   : > { %v1756_v47 = vpop.f32.mrf.mxu0 }
 0x8a0   : > { %4023 = vmatmul.msk.f32.gmra.mxu1 %vm775_vm2, %v1756_v47  ;;  %vm1811_vm2 = vweird.f32 %v4922_v0  ;;  %v4716_v47 = vld [vmem:[%s5102_s1 + $0xd4] sm:$0xf0] }
 0x915   : > { %v1784_v49 = vpop.f32.mrf.mxu1 }
 0x916   : > { %v1790_v50 = vadd.f32 %v1784_v49, %v5295_v54  ;;  %v1808_v54 = vsub.f32 1.0, %v1807_v38  ;;  %v4115_v49 = vor.u32 %v4716_v47, %v4114_v46  ;;  %v4050_v38 = vld [vmem:[%s5102_s1 + $0x18] sm:$0xf]  ;;  %v4059_v46 = vor.u32 %v4701_v35, %v4058_v34  ;;  %v4723_v34 = vld [vmem:[%s5114_s13 + $0x10] sm:$0xff] }
 0x917   : > { %v4063_v47 = vor.u32 %v4693_v40, %v4060_v41  ;;  %v4731_v35 = vld [vmem:[%s5114_s13 + $0x50] sm:$0xff]  ;;  %v4730_v40 = vld [vmem:[%s5114_s13 + $0x48] sm:$0xff]  ;;  %v4737_v41 = vld [vmem:[%s5114_s13 + $0x80] sm:$0xff] }
 0x918   : > { %v1796_v51 = vadd.f32 %v4883_v48, %v1790_v50  ;;  %v1809_v60 = vmul.f32 %v4922_v0, %v1808_v54  ;;  %v4708_v50 = vld [vmem:[%s5102_s1 + $0x9c] sm:$0xf]  ;;  %2185 = vmatpush.bf16.msra.mxu0 %v4115_v49  ;;  %v4700_v54 = vld [vmem:[%s5102_s1 + $0x54] sm:$0xf0] }
 0x91a   : > { %v1798_v52 = vadd.f32 %v1796_v51, %v5142_v9  ;;  %v1810_v9 = vadd.f32 %v4922_v0, %v1809_v60  ;;  %v4116_v51 = vld [vmem:[%s5102_s1 + $0xd8] sm:$0xf0] }
 0x91c   : > { %v1800_v53 = vsel %vm679_vm1, %v1798_v52, 0.0  ;;  %v5330_v1 = vsel %vm1811_vm2, %v4922_v0, %v1810_v9  ;;  %v4044_v0 = vld [vmem:[%s5102_s1 + $0x50] sm:$0xf0]  ;;  %v4051_v9 = vor.u32 %v4700_v54, %v4050_v38  ;;  %v4703_v38 = vld [vmem:[%s5102_s1 + $0x6c] sm:$0xf0] }
 0x91d   : > { %1801 = vadd.xlane.f32.xlu1 %v1800_v53  ;;  %v1787_v55 = vpop.f32.mrf.mxu1 }
 0x91e   : > { %v1791_v56 = vadd.f32 %v1787_v55, %v5299_v57  ;;  %2186 = vmatpush.bf16.msra.mxu0 %v4051_v9  ;;  %v4695_v9 = vld [vmem:[%s5102_s1 + $0x34] sm:$0xf] }
 0x920   : > { %v1797_v58 = vadd.f32 %v4883_v48, %v1791_v56  ;;  %v4111_v48 = vor.u32 %v4707_v42, %v4108_v45  ;;  %v4119_v56 = vor.u32 %v4708_v50, %v4116_v51  ;;  %v4066_v42 = vld [vmem:[%s5102_s1 + $0x28] sm:$0xf]  ;;  %v4068_v45 = vld [vmem:[%s5102_s1 + $0x68] sm:$0xf0]  ;;  %v4138_v50 = vld [vmem:[%s5102_s1 + $0xb0] sm:$0xf] }
 0x921   : > { %v4071_v49 = vor.u32 %v4694_v44, %v4068_v45  ;;  %v4719_v51 = vld [vmem:[%s5102_s1 + $0xec] sm:$0xf0]  ;;  %v4784_v44 = vld [vmem:[%s5114_s13 + $0x1f8] sm:$0xff]  ;;  %v4721_v45 = vld [vmem:[%s5114_s13] sm:$0xff] }
 0x922   : > { %v1799_v59 = vadd.f32 %v1797_v58, %v5145_v11  ;;  %v4699_v58 = vld [vmem:[%s5102_s1 + $0x4c] sm:$0xf0]  ;;  %2171 = vmatpush.bf16.msrb.mxu3 %v4111_v48  ;;  %2199 = vmatpush.bf16.msrb.mxu1 %v4119_v56  ;;  %v4720_v56 = vld [vmem:[%s5102_s1 + $0xf4] sm:$0xf0] }
 0x924   : > { %v1803_v62 = vsel %vm679_vm1, %v1799_v59, 0.0 }
 0x925   : > { %1804 = vadd.xlane.f32.xlu2 %v1803_v62 }
 0x990   : > { %v1802_v57 = vpop.xlane.xlu1 %1801 }
 0x991   : > { %v1813_v11 = vmul.f32 %v5330_v1, %v1802_v57  ;;  %v4692_v57 = vld [vmem:[%s5102_s1 + $0x1c] sm:$0xf] }
 0x993   : > { %v5333_v2 = vsub.f32 %v1798_v52, %v1813_v11  ;;  %v4042_v52 = vld [vmem:[%s5102_s1 + $0x10] sm:$0xf]  ;;  %v4052_v11 = vld [vmem:[%s5102_s1 + $0x58] sm:$0xf0] }
 0x994   : > { %v4043_v63 = vor.u32 %v4699_v58, %v4042_v52  ;;  %v4711_v52 = vld [vmem:[%s5102_s1 + $0xb4] sm:$0xf]  ;;  %v4712_v58 = vld [vmem:[%s5102_s1 + $0xbc] sm:$0xf] }
 0x995   : > { %v1817_v39 = vmul.f32 %v5333_v2, %v5333_v2 }
 0x996   : > { %2158 = vmatpush.bf16.msrb.mxu2 %v4043_v63 }
 0x997   : > { %v1819_v61 = vsel %vm679_vm1, %v1817_v39, 0.0 }
 0x998   : > { %1820 = vadd.xlane.f32.xlu0 %v1819_v61  ;;  %v1805_v3 = vpop.xlane.xlu2 %1804  ;;  %v4055_v61 = vor.u32 %v4692_v57, %v4052_v11  ;;  %v4076_v57 = vld [vmem:[%s5102_s1 + $0x70] sm:$0xf0]  ;;  %v4082_v11 = vld [vmem:[%s5102_s1 + $0x38] sm:$0xf] }
 0x999   : > { %v1814_v4 = vmul.f32 %v5330_v1, %v1805_v3 }
 0x99a   : > { %2200 = vmatpush.bf16.msrb.mxu1 %v4055_v61  ;;  %v4696_v61 = vld [vmem:[%s5102_s1 + $0x3c] sm:$0xf] }
 0x99b   : > { %v5339_v5 = vsub.f32 %v1799_v59, %v1814_v4  ;;  %v4691_v59 = vld [vmem:[%s5102_s1 + $0x14] sm:$0xf] }
 0x99c   : > { %v4047_v60 = vor.u32 %v4691_v59, %v4044_v0  ;;  %v4148_v59 = vld [vmem:[%s5102_s1 + $0xf8] sm:$0xf0]  ;;  %v4074_v0 = vld [vmem:[%s5102_s1 + $0x30] sm:$0xf] }
 0x99d   : > { %v1818_v6 = vmul.f32 %v5339_v5, %v5339_v5 }
 0x99e   : > { %2172 = vmatpush.bf16.msrb.mxu3 %v4047_v60  ;;  %v4151_v60 = vor.u32 %v4712_v58, %v4148_v59  ;;  %v4781_v58 = vld [vmem:[%s5114_s13 + $0x1e0] sm:$0xff]  ;;  %v4758_v59 = vld [vmem:[%s5114_s13 + $0x128] sm:$0xff] }
 0x99f   : > { %v1822_v7 = vsel %vm679_vm1, %v1818_v6, 0.0 }
 0x9a0   : > { %1823 = vadd.xlane.f32.xlu1 %v1822_v7 }
 0xa0b   : > { %v1821_v21 = vpop.xlane.xlu0 %1820 }
 0xa0c   : > { %v1825_v23 = vmul.f32 %v1821_v21, %v5330_v1 }
 0xa0e   : > { %v1827_v31 = vadd.f32 1e-05, %v1825_v23  ;;  %v4122_v23 = vld [vmem:[%s5102_s1 + $0xa0] sm:$0xf] }
 0xa10   : > { %4923 = vrsqrt.f32 %v1827_v31  ;;  %vm1835_vm8 = vweird.f32 %v1827_v31 }
 0xa13   : > { %v1824_v37 = vpop.xlane.xlu1 %1823 }
 0xa14   : > { %v1826_v43 = vmul.f32 %v1824_v37, %v5330_v1 }
 0xa16   : > { %v4924_v53 = vpop.eup %4923  ;;  %v1828_v55 = vadd.f32 1e-05, %v1826_v43  ;;  %v4702_v43 = vld [vmem:[%s5102_s1 + $0x64] sm:$0xf0] }
 0xa17   : > { %v1830_v62 = vmul.f32 %v4924_v53, %v1827_v31  ;;  %vm1836_vm7 = vweird.f32 %v4924_v53  ;;  %v4067_v48 = vor.u32 %v4702_v43, %v4066_v42  ;;  %v4745_v42 = vld [vmem:[%s5114_s13 + $0xc0] sm:$0xff]  ;;  %v4776_v43 = vld [vmem:[%s5114_s13 + $0x1b8] sm:$0xff] }
 0xa18   : > { %4925 = vrsqrt.f32 %v1828_v55  ;;  %vm1837_vm9 = vmor %vm1835_vm8, %vm1836_vm7  ;;  %vm1845_vm11 = vweird.f32 %v1828_v55 }
 0xa19   : > { %v1831_v39 = vmul.f32 %v4924_v53, %v1830_v62  ;;  %v4139_v62 = vor.u32 %v4719_v51, %v4138_v50  ;;  %v4783_v50 = vld [vmem:[%s5114_s13 + $0x1f0] sm:$0xff] }
 0xa1a   : > { %v4759_v51 = vld [vmem:[%s5114_s13 + $0x130] sm:$0xff] }
 0xa1b   : > { %v1832_v3 = vmul.f32 0.5, %v1831_v39  ;;  %v4704_v39 = vld [vmem:[%s5102_s1 + $0x74] sm:$0xf0] }
 0xa1d   : > { %v1833_v4 = vsub.f32 1.5, %v1832_v3  ;;  %v4084_v3 = vld [vmem:[%s5102_s1 + $0x78] sm:$0xf0] }
 0xa1e   : > { %v4926_v6 = vpop.eup %4925 }
 0xa1f   : > { %v1834_v7 = vmul.f32 %v4924_v53, %v1833_v4  ;;  %v1840_v8 = vmul.f32 %v4926_v6, %v1828_v55  ;;  %vm1846_vm10 = vweird.f32 %v4926_v6  ;;  %v4146_v55 = vld [vmem:[%s5102_s1 + $0xb8] sm:$0xf]  ;;  %v4075_v4 = vor.u32 %v4703_v38, %v4074_v0  ;;  %v4757_v38 = vld [vmem:[%s5114_s13 + $0x120] sm:$0xff] }
 0xa20   : > { %vm1847_vm12 = vmor %vm1845_vm11, %vm1846_vm10  ;;  %v4147_v54 = vor.u32 %v4720_v56, %v4146_v55  ;;  %v4782_v55 = vld [vmem:[%s5114_s13 + $0x1e8] sm:$0xff]  ;;  %v4773_v56 = vld [vmem:[%s5114_s13 + $0x1a0] sm:$0xff] }
 0xa21   : > { %v1841_v10 = vmul.f32 %v4926_v6, %v1840_v8  ;;  %v1838_v12 = vsel %vm1837_vm9, %v4924_v53, %v1834_v7  ;;  %v4140_v53 = vld [vmem:[%s5102_s1 + $0xf0] sm:$0xf0]  ;;  %v4083_v7 = vor.u32 %v4704_v39, %v4082_v11  ;;  %v4087_v8 = vor.u32 %v4696_v61, %v4084_v3  ;;  %v4780_v0 = vld [vmem:[%s5114_s13 + $0x1d8] sm:$0xff]  ;;  %v4770_v39 = vld [vmem:[%s5114_s13 + $0x188] sm:$0xff] }
 0xa22   : > { %v1849_v16 = vmul.f32 %v1838_v12, %v5333_v2  ;;  %v4717_v2 = vld [vmem:[%s5102_s1 + $0xdc] sm:$0xf0]  ;;  %v4143_v63 = vor.u32 %v4711_v52, %v4140_v53  ;;  %v4752_v12 = vld [vmem:[%s5114_s13 + $0xf8] sm:$0xff]  ;;  %v4767_v52 = vld [vmem:[%s5114_s13 + $0x170] sm:$0xff] }
 0xa23   : > { %v1842_v13 = vmul.f32 0.5, %v1841_v10  ;;  %v4123_v32 = vor.u32 %v4717_v2, %v4122_v23  ;;  %v4744_v10 = vld [vmem:[%s5114_s13 + $0xb8] sm:$0xff]  ;;  %v4741_v23 = vld [vmem:[%s5114_s13 + $0xa0] sm:$0xff]  ;;  %v4774_v53 = vld [vmem:[%s5114_s13 + $0x1a8] sm:$0xff] }
 0xa24   : > { %v1855_v20 = vmul.f32 %v4884_v15, %v1849_v16  ;;  %v4751_v16 = vld [vmem:[%s5114_s13 + $0xf0] sm:$0xff]  ;;  %v4749_v2 = vld [vmem:[%s5114_s13 + $0xe0] sm:$0xff]  ;;  %v4764_v11 = vld [vmem:[%s5114_s13 + $0x158] sm:$0xff] }
 0xa25   : > { %v1843_v14 = vsub.f32 1.5, %v1842_v13  ;;  %v4728_v13 = vld [vmem:[%s5114_s13 + $0x38] sm:$0xff]  ;;  %v4778_v61 = vld [vmem:[%s5114_s13 + $0x1c8] sm:$0xff]  ;;  %v4755_v3 = vld [vmem:[%s5114_s13 + $0x110] sm:$0xff] }
 0xa26   : > { %v5395_v27 = vadd.f32 %v4885_v19, %v1855_v20  ;;  %v4750_v20 = vld [vmem:[%s5114_s13 + $0xe8] sm:$0xff] }
 0xa27   : > { %v1844_v17 = vmul.f32 %v4926_v6, %v1843_v14  ;;  %v4736_v14 = vld [vmem:[%s5114_s13 + $0x78] sm:$0xff] }
 0xa29   : > { %v1848_v18 = vsel %vm1847_vm12, %v4926_v6, %v1844_v17  ;;  %v4079_v6 = vor.u32 %v4695_v9, %v4076_v57  ;;  %v4727_v17 = vld [vmem:[%s5114_s13 + $0x30] sm:$0xff]  ;;  %v4756_v57 = vld [vmem:[%s5114_s13 + $0x118] sm:$0xff] }
 0xa2a   : > { %v1850_v21 = vmul.f32 %v1848_v18, %v5339_v5  ;;  %v4132_v5 = vld [vmem:[%s5102_s1 + $0xe8] sm:$0xf0]  ;;  %v4735_v18 = vld [vmem:[%s5114_s13 + $0x70] sm:$0xff] }
 0xa2b   : > { %v4135_v37 = vor.u32 %v4710_v30, %v4132_v5  ;;  %v4724_v30 = vld [vmem:[%s5114_s13 + $0x18] sm:$0xff]  ;;  %v4779_v9 = vld [vmem:[%s5114_s13 + $0x1d0] sm:$0xff] }
 0xa2c   : > { %v1856_v22 = vmul.f32 %v4884_v15, %v1850_v21  ;;  %v4743_v15 = vld [vmem:[%s5114_s13 + $0xb0] sm:$0xff]  ;;  %v4726_v21 = vld [vmem:[%s5114_s13 + $0x28] sm:$0xff]  ;;  %v4732_v5 = vld [vmem:[%s5114_s13 + $0x58] sm:$0xff] }
 0xa2e   : > { %v5397_v28 = vadd.f32 %v4885_v19, %v1856_v22  ;;  %v4742_v19 = vld [vmem:[%s5114_s13 + $0xa8] sm:$0xff] }
 0xa2f   : > { %v4734_v22 = vld [vmem:[%s5114_s13 + $0x68] sm:$0xff] }
 0xa30   : > { %v5404_v31 = vpack.c.bf16 %v5397_v28, %v5395_v27 }
 0xa32   : > { %4152 = vmatmul.msk.bf16.vlgmr.msra.gmra.mxu2 %vm679_vm1, %v5404_v31  ;;  %4153 = vmatmul.msk.bf16.vlgmr.msra.gmra.mxu3 %vm679_vm1, %v5404_v31 }
 0xa33   : > { %4154 = vmatmul.msk.bf16.vlgmr.msrb.gmra.mxu0 %vm679_vm1, %v5404_v31  ;;  %4155 = vmatmul.msk.bf16.vlgmr.msra.gmra.mxu1 %vm679_vm1, %v5404_v31 }
 0xa34   : > { %2213 = vmatpush.bf16.msra.mxu2 %v4123_v32  ;;  %2227 = vmatpush.bf16.msra.mxu3 %v4127_v33  ;;  %v4739_v32 = vld [vmem:[%s5114_s13 + $0x90] sm:$0xff] }
 0xa35   : > { %2241 = vmatpush.bf16.msrb.mxu0 %v4131_v36  ;;  %2255 = vmatpush.bf16.msra.mxu1 %v4135_v37  ;;  %v4747_v33 = vld [vmem:[%s5114_s13 + $0xd0] sm:$0xff]  ;;  %v4738_v36 = vld [vmem:[%s5114_s13 + $0x88] sm:$0xff] }
 0xa36   : > { %v4722_v37 = vld [vmem:[%s5114_s13 + $0x8] sm:$0xff] }
 0xa38   : > { %2214 = vmatpush.bf16.msra.mxu2 %v4059_v46  ;;  %2228 = vmatpush.bf16.msra.mxu3 %v4063_v47  ;;  %v4729_v46 = vld [vmem:[%s5114_s13 + $0x40] sm:$0xff]  ;;  %v4760_v47 = vld [vmem:[%s5114_s13 + $0x138] sm:$0xff] }
 0xa39   : > { %2242 = vmatpush.bf16.msrb.mxu0 %v4067_v48  ;;  %2256 = vmatpush.bf16.msra.mxu1 %v4071_v49  ;;  %v4768_v48 = vld [vmem:[%s5114_s13 + $0x178] sm:$0xff]  ;;  %v4775_v49 = vld [vmem:[%s5114_s13 + $0x1b0] sm:$0xff] }
 0xa42   : > { %4156 = vmatmul.msk.bf16.vlgmr.msrb.gmra.mxu2 %vm679_vm1, %v5404_v31  ;;  %4157 = vmatmul.msk.bf16.vlgmr.msrb.gmra.mxu3 %vm679_vm1, %v5404_v31 }
 0xa43   : > { %4158 = vmatmul.msk.bf16.vlgmr.msra.gmra.mxu0 %vm679_vm1, %v5404_v31  ;;  %4159 = vmatmul.msk.bf16.vlgmr.msrb.gmra.mxu1 %vm679_vm1, %v5404_v31 }
 0xa44   : > { %2269 = vmatpush.bf16.msrb.mxu2 %v4139_v62  ;;  %2283 = vmatpush.bf16.msrb.mxu3 %v4143_v63  ;;  %v4766_v62 = vld [vmem:[%s5114_s13 + $0x168] sm:$0xff]  ;;  %v4772_v63 = vld [vmem:[%s5114_s13 + $0x198] sm:$0xff] }
 0xa45   : > { %2297 = vmatpush.bf16.msra.mxu0 %v4147_v54  ;;  %2311 = vmatpush.bf16.msrb.mxu1 %v4151_v60  ;;  %v4765_v54 = vld [vmem:[%s5114_s13 + $0x160] sm:$0xff]  ;;  %v4771_v60 = vld [vmem:[%s5114_s13 + $0x190] sm:$0xff] }
 0xa48   : > { %2270 = vmatpush.bf16.msrb.mxu2 %v4075_v4  ;;  %2284 = vmatpush.bf16.msrb.mxu3 %v4079_v6  ;;  %v4763_v4 = vld [vmem:[%s5114_s13 + $0x150] sm:$0xff]  ;;  %v4769_v6 = vld [vmem:[%s5114_s13 + $0x180] sm:$0xff] }
 0xa49   : > { %2298 = vmatpush.bf16.msra.mxu0 %v4083_v7  ;;  %2312 = vmatpush.bf16.msrb.mxu1 %v4087_v8  ;;  %v4777_v7 = vld [vmem:[%s5114_s13 + $0x1c0] sm:$0xff]  ;;  %v4754_v8 = vld [vmem:[%s5114_s13 + $0x108] sm:$0xff] }
 0xa52   : > { %4160 = vmatmul.msk.bf16.vlgmr.msra.gmra.mxu2 %vm679_vm1, %v5404_v31  ;;  %4161 = vmatmul.msk.bf16.vlgmr.msra.gmra.mxu3 %vm679_vm1, %v5404_v31 }
 0xa53   : > { %4162 = vmatmul.msk.bf16.vlgmr.msrb.gmra.mxu0 %vm679_vm1, %v5404_v31  ;;  %4163 = vmatmul.msk.bf16.vlgmr.msra.gmra.mxu1 %vm679_vm1, %v5404_v31 }
 0xa54   : > { %3423 = vmatpush.bf16.msrb.mxu0 %v4744_v10  ;;  %3437 = vmatpush.bf16.msra.mxu1 %v4752_v12  ;;  %v4762_v10 = vld [vmem:[%s5114_s13 + $0x148] sm:$0xff]  ;;  %v4753_v12 = vld [vmem:[%s5114_s13 + $0x100] sm:$0xff] }
 0xa55   : > { %3395 = vmatpush.bf16.msra.mxu2 %v4728_v13  ;;  %3409 = vmatpush.bf16.msra.mxu3 %v4736_v14  ;;  %v4761_v13 = vld [vmem:[%s5114_s13 + $0x140] sm:$0xff] }
 0xa56   : > { %v5527_v14 = vld [vmem:[%s5108_s15] sm:$0xff] }
 0xa58   : > { %3424 = vmatpush.bf16.msrb.mxu0 %v4743_v15  ;;  %3438 = vmatpush.bf16.msra.mxu1 %v4751_v16 }
 0xa59   : > { %3396 = vmatpush.bf16.msra.mxu2 %v4727_v17  ;;  %3410 = vmatpush.bf16.msra.mxu3 %v4735_v18  ;;  %v1902_v17 = vperm.slane %v5527_v14, 2  ;;  %v1903_v18 = vperm.slane %v5527_v14, 3 }
 0xa5c   : > { %3425 = vmatpush.bf16.msrb.mxu0 %v4742_v19  ;;  %3439 = vmatpush.bf16.msra.mxu1 %v4750_v20 }
 0xa5d   : > { %3397 = vmatpush.bf16.msra.mxu2 %v4726_v21  ;;  %3411 = vmatpush.bf16.msra.mxu3 %v4734_v22 }
 0xa60   : > { %3426 = vmatpush.bf16.msrb.mxu0 %v4741_v23  ;;  %3440 = vmatpush.bf16.msra.mxu1 %v4749_v2  ;;  %v1900_v23 = vperm.slane %v5527_v14, 0  ;;  %v1901_v2 = vperm.slane %v5527_v14, 1 }
 0xa61   : > { %3398 = vmatpush.bf16.msra.mxu2 %v4725_v24  ;;  %3412 = vmatpush.bf16.msra.mxu3 %v4733_v25 }
 0xa62   : > { %4164 = vmatmul.msk.bf16.vlgmr.msrb.gmra.mxu2 %vm679_vm1, %v5404_v31  ;;  %4165 = vmatmul.msk.bf16.vlgmr.msrb.gmra.mxu3 %vm679_vm1, %v5404_v31 }
 0xa63   : > { %4166 = vmatmul.msk.bf16.vlgmr.msra.gmra.mxu0 %vm679_vm1, %v5404_v31  ;;  %4167 = vmatmul.msk.bf16.vlgmr.msrb.gmra.mxu1 %vm679_vm1, %v5404_v31  ;;  %v4746_v31 = vld [vmem:[%s5114_s13 + $0xc8] sm:$0xff] }
 0xa64   : > { %3427 = vmatpush.bf16.msrb.mxu0 %v4740_v26  ;;  %3441 = vmatpush.bf16.msra.mxu1 %v4748_v29 }
 0xa65   : > { %3399 = vmatpush.bf16.msra.mxu2 %v4724_v30  ;;  %3413 = vmatpush.bf16.msra.mxu3 %v4732_v5 }
 0xa68   : > { %3428 = vmatpush.bf16.msrb.mxu0 %v4739_v32  ;;  %3442 = vmatpush.bf16.msra.mxu1 %v4747_v33 }
 0xa69   : > { %3400 = vmatpush.bf16.msra.mxu2 %v4723_v34  ;;  %3414 = vmatpush.bf16.msra.mxu3 %v4731_v35 }
 0xa6c   : > { %3429 = vmatpush.bf16.msrb.mxu0 %v4738_v36  ;;  %3443 = vmatpush.bf16.msra.mxu1 %v4746_v31  ;;  %v4808_v36 = vld [vmem:[%s5114_s13 + $0x2b8] sm:$0xff] }
 0xa6d   : > { %3401 = vmatpush.bf16.msra.mxu2 %v4722_v37  ;;  %3415 = vmatpush.bf16.msra.mxu3 %v4730_v40  ;;  %v4816_v31 = vld [vmem:[%s5114_s13 + $0x2f8] sm:$0xff] }
 0xa70   : > { %3430 = vmatpush.bf16.msrb.mxu0 %v4737_v41  ;;  %3444 = vmatpush.bf16.msra.mxu1 %v4745_v42 }
 0xa71   : > { %3402 = vmatpush.bf16.msra.mxu2 %v4721_v45  ;;  %3416 = vmatpush.bf16.msra.mxu3 %v4729_v46 }
 0xa74   : > { %3479 = vmatpush.bf16.msra.mxu0 %v4776_v43  ;;  %3493 = vmatpush.bf16.msrb.mxu1 %v4784_v44 }
 0xa75   : > { %3451 = vmatpush.bf16.msrb.mxu2 %v4760_v47  ;;  %3465 = vmatpush.bf16.msrb.mxu3 %v4768_v48 }
 0xa78   : > { %3480 = vmatpush.bf16.msra.mxu0 %v4775_v49  ;;  %3494 = vmatpush.bf16.msrb.mxu1 %v4783_v50 }
 0xa79   : > { %3452 = vmatpush.bf16.msrb.mxu2 %v4759_v51  ;;  %3466 = vmatpush.bf16.msrb.mxu3 %v4767_v52  ;;  %v4807_v51 = vld [vmem:[%s5114_s13 + $0x2b0] sm:$0xff] }
 0xa7a   : > { %v4815_v52 = vld [vmem:[%s5114_s13 + $0x2f0] sm:$0xff] }
 0xa7c   : > { %3481 = vmatpush.bf16.msra.mxu0 %v4774_v53  ;;  %3495 = vmatpush.bf16.msrb.mxu1 %v4782_v55 }
 0xa7d   : > { %3453 = vmatpush.bf16.msrb.mxu2 %v4758_v59  ;;  %3467 = vmatpush.bf16.msrb.mxu3 %v4766_v62  ;;  %v1906_v59 = vperm.slane %v5527_v14, 6  ;;  %v1907_v62 = vperm.slane %v5527_v14, 7 }
 0xa80   : > { %3482 = vmatpush.bf16.msra.mxu0 %v4773_v56  ;;  %3496 = vmatpush.bf16.msrb.mxu1 %v4781_v58  ;;  %v4792_v56 = vld [vmem:[%s5114_s13 + $0x238] sm:$0xff] }
 0xa81   : > { %3454 = vmatpush.bf16.msrb.mxu2 %v4757_v38  ;;  %3468 = vmatpush.bf16.msrb.mxu3 %v4765_v54  ;;  %v4800_v58 = vld [vmem:[%s5114_s13 + $0x278] sm:$0xff] }
 0xa84   : > { %3483 = vmatpush.bf16.msra.mxu0 %v4772_v63  ;;  %3497 = vmatpush.bf16.msrb.mxu1 %v4780_v0  ;;  %v4806_v63 = vld [vmem:[%s5114_s13 + $0x2a8] sm:$0xff] }
 0xa85   : > { %3455 = vmatpush.bf16.msrb.mxu2 %v4756_v57  ;;  %3469 = vmatpush.bf16.msrb.mxu3 %v4764_v11  ;;  %v4814_v0 = vld [vmem:[%s5114_s13 + $0x2e8] sm:$0xff] }
 0xa88   : > { %3484 = vmatpush.bf16.msra.mxu0 %v4771_v60  ;;  %3498 = vmatpush.bf16.msrb.mxu1 %v4779_v9  ;;  %v4791_v60 = vld [vmem:[%s5114_s13 + $0x230] sm:$0xff] }
 0xa89   : > { %3456 = vmatpush.bf16.msrb.mxu2 %v4755_v3  ;;  %3470 = vmatpush.bf16.msrb.mxu3 %v4763_v4  ;;  %v4799_v9 = vld [vmem:[%s5114_s13 + $0x270] sm:$0xff] }
 0xa8c   : > { %3485 = vmatpush.bf16.msra.mxu0 %v4770_v39  ;;  %3499 = vmatpush.bf16.msrb.mxu1 %v4778_v61  ;;  %v1904_v39 = vperm.slane %v5527_v14, 4  ;;  %v1905_v61 = vperm.slane %v5527_v14, 5 }
 0xa8d   : > { %3457 = vmatpush.bf16.msrb.mxu2 %v4754_v8  ;;  %3471 = vmatpush.bf16.msrb.mxu3 %v4762_v10 }
 0xa90   : > { %3486 = vmatpush.bf16.msra.mxu0 %v4769_v6  ;;  %3500 = vmatpush.bf16.msrb.mxu1 %v4777_v7  ;;  %v4805_v6 = vld [vmem:[%s5114_s13 + $0x2a0] sm:$0xff] }
 0xa91   : > { %3458 = vmatpush.bf16.msrb.mxu2 %v4753_v12  ;;  %3472 = vmatpush.bf16.msrb.mxu3 %v4761_v13  ;;  %v4813_v7 = vld [vmem:[%s5114_s13 + $0x2e0] sm:$0xff]  ;;  %v4790_v12 = vld [vmem:[%s5114_s13 + $0x228] sm:$0xff] }
 0xa92   : > { %v4798_v13 = vld [vmem:[%s5114_s13 + $0x268] sm:$0xff] }
 0xab0   : > { %v2132_v15 = vpop.f32.mrf.mxu0  ;;  %v2146_v16 = vpop.f32.mrf.mxu1 }
 0xab1   : > { %v2133_v21 = vadd.f32 %v2132_v15, %v1902_v17  ;;  %v2147_v22 = vadd.f32 %v2146_v16, %v1903_v18 }
 0xab3   : > { %v2321_v30 = vmax.f32 %v2133_v21, 0.0  ;;  %v2322_v5 = vmax.f32 %v2147_v22, 0.0  ;;  %v4812_v21 = vld [vmem:[%s5114_s13 + $0x2d8] sm:$0xff] }
 0xab5   : > { %v2104_v19 = vpop.f32.mrf.mxu2  ;;  %v2118_v20 = vpop.f32.mrf.mxu3 }
 0xab6   : > { %v2105_v34 = vadd.f32 %v2104_v19, %v1900_v23  ;;  %v2119_v35 = vadd.f32 %v2118_v20, %v1901_v2  ;;  %v4804_v20 = vld [vmem:[%s5114_s13 + $0x298] sm:$0xff] }
 0xab8   : > { %v2134_v24 = vpop.f32.mrf.mxu0  ;;  %v2148_v25 = vpop.f32.mrf.mxu1  ;;  %v2319_v45 = vmax.f32 %v2105_v34, 0.0  ;;  %v2320_v46 = vmax.f32 %v2119_v35, 0.0 }
 0xab9   : > { %v2135_v26 = vadd.f32 %v2134_v24, %v1902_v17  ;;  %v2149_v29 = vadd.f32 %v2148_v25, %v1903_v18 }
 0xabb   : > { %v2337_v32 = vmax.f32 %v2135_v26, 0.0  ;;  %v2338_v33 = vmax.f32 %v2149_v29, 0.0  ;;  %v4789_v29 = vld [vmem:[%s5114_s13 + $0x220] sm:$0xff] }
 0xabd   : > { %v2353_v37 = vpack.c.bf16 %v2337_v32, %v2321_v30  ;;  %v2354_v40 = vpack.c.bf16 %v2338_v33, %v2322_v5  ;;  %v2106_v41 = vpop.f32.mrf.mxu2  ;;  %v2120_v42 = vpop.f32.mrf.mxu3  ;;  %v4797_v30 = vld [vmem:[%s5114_s13 + $0x260] sm:$0xff]  ;;  %v5556_v5 = vld [vmem:[%s5108_s15 + $0x8] sm:$0xff] }
 0xabe   : > { %v2107_v43 = vadd.f32 %v2106_v41, %v1900_v23  ;;  %v2121_v44 = vadd.f32 %v2120_v42, %v1901_v2 }
 0xabf   : > { %3431 = vmatmul.bf16.vlgmr.msrb.gmra.mxu0 %v2353_v37  ;;  %3445 = vmatmul.bf16.vlgmr.msra.gmra.mxu1 %v2354_v40  ;;  %v4803_v37 = vld [vmem:[%s5114_s13 + $0x290] sm:$0xff] }
 0xac0   : > { %v2335_v47 = vmax.f32 %v2107_v43, 0.0  ;;  %v2336_v48 = vmax.f32 %v2121_v44, 0.0  ;;  %3535 = vmatpush.bf16.msrb.mxu0 %v4808_v36  ;;  %3549 = vmatpush.bf16.msra.mxu1 %v4816_v31  ;;  %v2188_v49 = vpop.f32.mrf.mxu0  ;;  %v2202_v50 = vpop.f32.mrf.mxu1  ;;  %v4811_v40 = vld [vmem:[%s5114_s13 + $0x2d0] sm:$0xff]  ;;  %v4788_v43 = vld [vmem:[%s5114_s13 + $0x218] sm:$0xff] }
 0xac1   : > { %v2189_v57 = vadd.f32 %v2188_v49, %v1906_v59  ;;  %v2203_v11 = vadd.f32 %v2202_v50, %v1907_v62  ;;  %v4796_v44 = vld [vmem:[%s5114_s13 + $0x258] sm:$0xff] }
 0xac2   : > { %v2351_v53 = vpack.c.bf16 %v2335_v47, %v2319_v45  ;;  %v2352_v55 = vpack.c.bf16 %v2336_v48, %v2320_v46  ;;  %v1910_v45 = vperm.slane %v5556_v5, 2  ;;  %v1911_v46 = vperm.slane %v5556_v5, 3  ;;  %v4802_v47 = vld [vmem:[%s5114_s13 + $0x288] sm:$0xff] }
 0xac3   : > { %v2325_v15 = vmax.f32 %v2189_v57, 0.0  ;;  %v2326_v16 = vmax.f32 %v2203_v11, 0.0  ;;  %v4810_v48 = vld [vmem:[%s5114_s13 + $0x2c8] sm:$0xff] }
 0xac4   : > { %3536 = vmatpush.bf16.msrb.mxu0 %v4807_v51  ;;  %3550 = vmatpush.bf16.msra.mxu1 %v4815_v52  ;;  %v4787_v51 = vld [vmem:[%s5114_s13 + $0x210] sm:$0xff]  ;;  %v4786_v57 = vld [vmem:[%s5114_s13 + $0x208] sm:$0xff] }
 0xac5   : > { %3403 = vmatmul.bf16.vlgmr.msra.gmra.mxu2 %v2351_v53  ;;  %3417 = vmatmul.bf16.vlgmr.msra.gmra.mxu3 %v2352_v55  ;;  %v2160_v38 = vpop.f32.mrf.mxu2  ;;  %v2174_v54 = vpop.f32.mrf.mxu3  ;;  %v4795_v52 = vld [vmem:[%s5114_s13 + $0x250] sm:$0xff]  ;;  %v4794_v11 = vld [vmem:[%s5114_s13 + $0x248] sm:$0xff] }
 0xac6   : > { %3507 = vmatpush.bf16.msra.mxu2 %v4792_v56  ;;  %3521 = vmatpush.bf16.msra.mxu3 %v4800_v58  ;;  %v2161_v14 = vadd.f32 %v2160_v38, %v1904_v39  ;;  %v2175_v19 = vadd.f32 %v2174_v54, %v1905_v61  ;;  %v1908_v56 = vperm.slane %v5556_v5, 0  ;;  %v1909_v58 = vperm.slane %v5556_v5, 1 }
 0xac8   : > { %3537 = vmatpush.bf16.msrb.mxu0 %v4806_v63  ;;  %3551 = vmatpush.bf16.msra.mxu1 %v4814_v0  ;;  %v2190_v3 = vpop.f32.mrf.mxu0  ;;  %v2204_v4 = vpop.f32.mrf.mxu1  ;;  %v2323_v32 = vmax.f32 %v2161_v14, 0.0  ;;  %v2324_v33 = vmax.f32 %v2175_v19, 0.0  ;;  %v4801_v63 = vld [vmem:[%s5114_s13 + $0x280] sm:$0xff] }
 0xac9   : > { %v2191_v8 = vadd.f32 %v2190_v3, %v1906_v59  ;;  %v2205_v10 = vadd.f32 %v2204_v4, %v1907_v62  ;;  %v4809_v0 = vld [vmem:[%s5114_s13 + $0x2c0] sm:$0xff] }
 0xaca   : > { %3508 = vmatpush.bf16.msra.mxu2 %v4791_v60  ;;  %3522 = vmatpush.bf16.msra.mxu3 %v4799_v9  ;;  %v4840_v60 = vld [vmem:[%s5114_s13 + $0x3b8] sm:$0xff]  ;;  %v4785_v14 = vld [vmem:[%s5114_s13 + $0x200] sm:$0xff] }
 0xacb   : > { %v2341_v17 = vmax.f32 %v2191_v8, 0.0  ;;  %v2342_v18 = vmax.f32 %v2205_v10, 0.0  ;;  %v4848_v9 = vld [vmem:[%s5114_s13 + $0x3f8] sm:$0xff]  ;;  %v4793_v19 = vld [vmem:[%s5114_s13 + $0x240] sm:$0xff] }
 0xacc   : > { %3538 = vmatpush.bf16.msrb.mxu0 %v4805_v6  ;;  %3552 = vmatpush.bf16.msra.mxu1 %v4813_v7 }
 0xacd   : > { %v2357_v22 = vpack.c.bf16 %v2341_v17, %v2325_v15  ;;  %v2358_v23 = vpack.c.bf16 %v2342_v18, %v2326_v16  ;;  %v2162_v2 = vpop.f32.mrf.mxu2  ;;  %v2176_v24 = vpop.f32.mrf.mxu3  ;;  %v4839_v15 = vld [vmem:[%s5114_s13 + $0x3b0] sm:$0xff] }
 0xace   : > { %3509 = vmatpush.bf16.msra.mxu2 %v4790_v12  ;;  %3523 = vmatpush.bf16.msra.mxu3 %v4798_v13  ;;  %v2163_v25 = vadd.f32 %v2162_v2, %v1904_v39  ;;  %v2177_v26 = vadd.f32 %v2176_v24, %v1905_v61  ;;  %v4847_v16 = vld [vmem:[%s5114_s13 + $0x3f0] sm:$0xff] }
 0xacf   : > { %3487 = vmatmul.bf16.vlgmr.msra.gmra.mxu0 %v2357_v22  ;;  %3501 = vmatmul.bf16.vlgmr.msrb.gmra.mxu1 %v2358_v23 }
 0xad0   : > { %v2339_v34 = vmax.f32 %v2163_v25, 0.0  ;;  %v2340_v35 = vmax.f32 %v2177_v26, 0.0  ;;  %3539 = vmatpush.bf16.msrb.mxu0 %v4804_v20  ;;  %3553 = vmatpush.bf16.msra.mxu1 %v4812_v21  ;;  %v2244_v36 = vpop.f32.mrf.mxu0  ;;  %v2258_v31 = vpop.f32.mrf.mxu1  ;;  %v4824_v20 = vld [vmem:[%s5114_s13 + $0x338] sm:$0xff]  ;;  %v4838_v25 = vld [vmem:[%s5114_s13 + $0x3a8] sm:$0xff] }
 0xad1   : > { %v2245_v53 = vadd.f32 %v2244_v36, %v1910_v45  ;;  %v2259_v55 = vadd.f32 %v2258_v31, %v1911_v46  ;;  %v4832_v21 = vld [vmem:[%s5114_s13 + $0x378] sm:$0xff]  ;;  %v4846_v26 = vld [vmem:[%s5114_s13 + $0x3e8] sm:$0xff]  ;;  %v4837_v36 = vld [vmem:[%s5114_s13 + $0x3a0] sm:$0xff] }
 0xad2   : > { %v2355_v41 = vpack.c.bf16 %v2339_v34, %v2323_v32  ;;  %v2356_v42 = vpack.c.bf16 %v2340_v35, %v2324_v33  ;;  %3510 = vmatpush.bf16.msra.mxu2 %v4789_v29  ;;  %3524 = vmatpush.bf16.msra.mxu3 %v4797_v30  ;;  %v4823_v32 = vld [vmem:[%s5114_s13 + $0x330] sm:$0xff]  ;;  %v4845_v31 = vld [vmem:[%s5114_s13 + $0x3e0] sm:$0xff] }
 0xad3   : > { %v2329_v39 = vmax.f32 %v2245_v53, 0.0  ;;  %v2330_v61 = vmax.f32 %v2259_v55, 0.0  ;;  %v4831_v33 = vld [vmem:[%s5114_s13 + $0x370] sm:$0xff]  ;;  %v1914_v53 = vperm.slane %v5556_v5, 6  ;;  %v1915_v55 = vperm.slane %v5556_v5, 7 }
 0xad4   : > { %3540 = vmatpush.bf16.msrb.mxu0 %v4803_v37  ;;  %3554 = vmatpush.bf16.msra.mxu1 %v4811_v40  ;;  %v4822_v37 = vld [vmem:[%s5114_s13 + $0x328] sm:$0xff] }
 0xad5   : > { %3459 = vmatmul.bf16.vlgmr.msrb.gmra.mxu2 %v2355_v41  ;;  %3473 = vmatmul.bf16.vlgmr.msrb.gmra.mxu3 %v2356_v42  ;;  %v2216_v49 = vpop.f32.mrf.mxu2  ;;  %v2230_v50 = vpop.f32.mrf.mxu3  ;;  %v4830_v40 = vld [vmem:[%s5114_s13 + $0x368] sm:$0xff]  ;;  %v4836_v41 = vld [vmem:[%s5114_s13 + $0x398] sm:$0xff] }
 0xad6   : > { %3511 = vmatpush.bf16.msra.mxu2 %v4788_v43  ;;  %3525 = vmatpush.bf16.msra.mxu3 %v4796_v44  ;;  %v2217_v6 = vadd.f32 %v2216_v49, %v1908_v56  ;;  %v2231_v7 = vadd.f32 %v2230_v50, %v1909_v58  ;;  %v4844_v42 = vld [vmem:[%s5114_s13 + $0x3d8] sm:$0xff] }
 0xad8   : > { %3541 = vmatpush.bf16.msrb.mxu0 %v4802_v47  ;;  %3555 = vmatpush.bf16.msra.mxu1 %v4810_v48  ;;  %v2246_v59 = vpop.f32.mrf.mxu0  ;;  %v2260_v62 = vpop.f32.mrf.mxu1  ;;  %v2327_v22 = vmax.f32 %v2217_v6, 0.0  ;;  %v2328_v23 = vmax.f32 %v2231_v7, 0.0  ;;  %v4835_v47 = vld [vmem:[%s5114_s13 + $0x390] sm:$0xff]  ;;  %v4818_v6 = vld [vmem:[%s5114_s13 + $0x308] sm:$0xff] }
 0xad9   : > { %v2247_v38 = vadd.f32 %v2246_v59, %v1910_v45  ;;  %v2261_v54 = vadd.f32 %v2260_v62, %v1911_v46  ;;  %v4821_v45 = vld [vmem:[%s5114_s13 + $0x320] sm:$0xff]  ;;  %v4843_v48 = vld [vmem:[%s5114_s13 + $0x3d0] sm:$0xff]  ;;  %v4826_v7 = vld [vmem:[%s5114_s13 + $0x348] sm:$0xff] }
 0xada   : > { %3512 = vmatpush.bf16.msra.mxu2 %v4787_v51  ;;  %3526 = vmatpush.bf16.msra.mxu3 %v4795_v52  ;;  %v4829_v46 = vld [vmem:[%s5114_s13 + $0x360] sm:$0xff]  ;;  %v4820_v51 = vld [vmem:[%s5114_s13 + $0x318] sm:$0xff] }
 0xadb   : > { %v2345_v3 = vmax.f32 %v2247_v38, 0.0  ;;  %v2346_v4 = vmax.f32 %v2261_v54, 0.0  ;;  %v4828_v52 = vld [vmem:[%s5114_s13 + $0x358] sm:$0xff] }
 0xadc   : > { %3542 = vmatpush.bf16.msrb.mxu0 %v4801_v63  ;;  %3556 = vmatpush.bf16.msra.mxu1 %v4809_v0  ;;  %v4819_v63 = vld [vmem:[%s5114_s13 + $0x310] sm:$0xff] }
 0xadd   : > { %v2361_v8 = vpack.c.bf16 %v2345_v3, %v2329_v39  ;;  %v2362_v10 = vpack.c.bf16 %v2346_v4, %v2330_v61  ;;  %v2218_v12 = vpop.f32.mrf.mxu2  ;;  %v2232_v13 = vpop.f32.mrf.mxu3  ;;  %v4827_v0 = vld [vmem:[%s5114_s13 + $0x350] sm:$0xff]  ;;  %v1912_v39 = vperm.slane %v5556_v5, 4  ;;  %v1913_v61 = vperm.slane %v5556_v5, 5  ;;  %v4817_v5 = vld [vmem:[%s5114_s13 + $0x300] sm:$0xff] }
 0xade   : > { %3513 = vmatpush.bf16.msra.mxu2 %v4786_v57  ;;  %3527 = vmatpush.bf16.msra.mxu3 %v4794_v11  ;;  %v2219_v17 = vadd.f32 %v2218_v12, %v1908_v56  ;;  %v2233_v18 = vadd.f32 %v2232_v13, %v1909_v58  ;;  %v4834_v56 = vld [vmem:[%s5114_s13 + $0x388] sm:$0xff]  ;;  %v4833_v57 = vld [vmem:[%s5114_s13 + $0x380] sm:$0xff] }
 0xadf   : > { %3543 = vmatmul.bf16.vlgmr.msrb.gmra.mxu0 %v2361_v8  ;;  %3557 = vmatmul.bf16.vlgmr.msra.gmra.mxu1 %v2362_v10  ;;  %v4842_v58 = vld [vmem:[%s5114_s13 + $0x3c8] sm:$0xff]  ;;  %v4841_v11 = vld [vmem:[%s5114_s13 + $0x3c0] sm:$0xff] }
 0xae0   : > { %3591 = vmatpush.bf16.msra.mxu0 %v4840_v60  ;;  %3605 = vmatpush.bf16.msrb.mxu1 %v4848_v9  ;;  %v2343_v2 = vmax.f32 %v2219_v17, 0.0  ;;  %v2344_v24 = vmax.f32 %v2233_v18, 0.0  ;;  %v2300_v34 = vpop.f32.mrf.mxu0  ;;  %v2314_v35 = vpop.f32.mrf.mxu1 }
 0xae1   : > { %v2301_v38 = vadd.f32 %v2300_v34, %v1914_v53  ;;  %v2315_v54 = vadd.f32 %v2314_v35, %v1915_v55  ;;  %v4886_v34 = vld [vmem:[%s652_s3] ss:$0 sm:$0xff] }
 0xae2   : > { %v2359_v29 = vpack.c.bf16 %v2343_v2, %v2327_v22  ;;  %v2360_v30 = vpack.c.bf16 %v2344_v24, %v2328_v23  ;;  %3514 = vmatpush.bf16.msra.mxu2 %v4785_v14  ;;  %3528 = vmatpush.bf16.msra.mxu3 %v4793_v19  ;;  %v4825_v14 = vld [vmem:[%s5114_s13 + $0x340] sm:$0xff] }
 0xae3   : > { %v2333_v8 = vmax.f32 %v2301_v38, 0.0  ;;  %v2334_v10 = vmax.f32 %v2315_v54, 0.0 }
 0xae4   : > { %3592 = vmatpush.bf16.msra.mxu0 %v4839_v15  ;;  %3606 = vmatpush.bf16.msrb.mxu1 %v4847_v16 }
 0xae5   : > { %3515 = vmatmul.bf16.vlgmr.msra.gmra.mxu2 %v2359_v29  ;;  %3529 = vmatmul.bf16.vlgmr.msra.gmra.mxu3 %v2360_v30  ;;  %v2272_v43 = vpop.f32.mrf.mxu2  ;;  %v2286_v44 = vpop.f32.mrf.mxu3 }
 0xae6   : > { %3563 = vmatpush.bf16.msrb.mxu2 %v4824_v20  ;;  %3577 = vmatpush.bf16.msrb.mxu3 %v4832_v21  ;;  %v2273_v15 = vadd.f32 %v2272_v43, %v1912_v39  ;;  %v2287_v16 = vadd.f32 %v2286_v44, %v1913_v61 }
 0xae8   : > { %3593 = vmatpush.bf16.msra.mxu0 %v4838_v25  ;;  %3607 = vmatpush.bf16.msrb.mxu1 %v4846_v26  ;;  %v2302_v49 = vpop.f32.mrf.mxu0  ;;  %v2316_v50 = vpop.f32.mrf.mxu1  ;;  %v2331_v21 = vmax.f32 %v2273_v15, 0.0  ;;  %v2332_v22 = vmax.f32 %v2287_v16, 0.0 }
 0xae9   : > { %v2303_v59 = vadd.f32 %v2302_v49, %v1914_v53  ;;  %v2317_v62 = vadd.f32 %v2316_v50, %v1915_v55 }
 0xaea   : > { %3564 = vmatpush.bf16.msrb.mxu2 %v4823_v32  ;;  %3578 = vmatpush.bf16.msrb.mxu3 %v4831_v33 }
 0xaeb   : > { %v2349_v3 = vmax.f32 %v2303_v59, 0.0  ;;  %v2350_v4 = vmax.f32 %v2317_v62, 0.0 }
 0xaec   : > { %3594 = vmatpush.bf16.msra.mxu0 %v4837_v36  ;;  %3608 = vmatpush.bf16.msrb.mxu1 %v4845_v31 }
 0xaed   : > { %v2274_v60 = vpop.f32.mrf.mxu2  ;;  %v2288_v9 = vpop.f32.mrf.mxu3  ;;  %v2365_v17 = vpack.c.bf16 %v2349_v3, %v2333_v8  ;;  %v2366_v18 = vpack.c.bf16 %v2350_v4, %v2334_v10 }
 0xaee   : > { %3565 = vmatpush.bf16.msrb.mxu2 %v4822_v37  ;;  %3579 = vmatpush.bf16.msrb.mxu3 %v4830_v40  ;;  %v2275_v12 = vadd.f32 %v2274_v60, %v1912_v39  ;;  %v2289_v13 = vadd.f32 %v2288_v9, %v1913_v61 }
 0xaf0   : > { %3595 = vmatpush.bf16.msra.mxu0 %v4836_v41  ;;  %3609 = vmatpush.bf16.msrb.mxu1 %v4844_v42  ;;  %v2347_v19 = vmax.f32 %v2275_v12, 0.0  ;;  %v2348_v20 = vmax.f32 %v2289_v13, 0.0 }
 0xaf2   : > { %3566 = vmatpush.bf16.msrb.mxu2 %v4821_v45  ;;  %3580 = vmatpush.bf16.msrb.mxu3 %v4829_v46  ;;  %v2363_v23 = vpack.c.bf16 %v2347_v19, %v2331_v21  ;;  %v2364_v2 = vpack.c.bf16 %v2348_v20, %v2332_v22 }
 0xaf4   : > { %3596 = vmatpush.bf16.msra.mxu0 %v4835_v47  ;;  %3610 = vmatpush.bf16.msrb.mxu1 %v4843_v48 }
 0xaf6   : > { %3567 = vmatpush.bf16.msrb.mxu2 %v4820_v51  ;;  %3581 = vmatpush.bf16.msrb.mxu3 %v4828_v52 }
 0xaf8   : > { %3597 = vmatpush.bf16.msra.mxu0 %v4834_v56  ;;  %3611 = vmatpush.bf16.msrb.mxu1 %v4842_v58 }
 0xafa   : > { %3568 = vmatpush.bf16.msrb.mxu2 %v4819_v63  ;;  %3582 = vmatpush.bf16.msrb.mxu3 %v4827_v0 }
 0xafc   : > { %3598 = vmatpush.bf16.msra.mxu0 %v4833_v57  ;;  %3612 = vmatpush.bf16.msrb.mxu1 %v4841_v11 }
 0xafe   : > { %3569 = vmatpush.bf16.msrb.mxu2 %v4818_v6  ;;  %3583 = vmatpush.bf16.msrb.mxu3 %v4826_v7 }
 0xaff   : > { %3599 = vmatmul.bf16.vlgmr.msra.gmra.mxu0 %v2365_v17  ;;  %3613 = vmatmul.bf16.vlgmr.msrb.gmra.mxu1 %v2366_v18 }
 0xb02   : > { %3570 = vmatpush.bf16.msrb.mxu2 %v4817_v5  ;;  %3584 = vmatpush.bf16.msrb.mxu3 %v4825_v14 }
 0xb05   : > { %3571 = vmatmul.bf16.vlgmr.msrb.gmra.mxu2 %v2363_v23  ;;  %3585 = vmatmul.bf16.vlgmr.msrb.gmra.mxu3 %v2364_v2 }
 0xb3c   : > { %v3432_v26 = vpop.f32.mrf.mxu0  ;;  %v3446_v29 = vpop.f32.mrf.mxu1 }
 0xb44   : > { %v3434_v33 = vpop.f32.mrf.mxu0  ;;  %v3448_v35 = vpop.f32.mrf.mxu1 }
 0xb48   : > { %v3404_v24 = vpop.f32.mrf.mxu2  ;;  %v3418_v25 = vpop.f32.mrf.mxu3 }
 0xb49   : > { %v3405_v36 = vadd.f32 %v4886_v34, %v3404_v24 }
 0xb4b   : > { %v3419_v40 = vadd.f32 %v3418_v25, %v3405_v36 }
 0xb4c   : > { %v3488_v41 = vpop.f32.mrf.mxu0  ;;  %v3502_v42 = vpop.f32.mrf.mxu1 }
 0xb4d   : > { %v3433_v43 = vadd.f32 %v3432_v26, %v3419_v40 }
 0xb4f   : > { %v3447_v46 = vadd.f32 %v3446_v29, %v3433_v43 }
 0xb50   : > { %v3406_v30 = vpop.f32.mrf.mxu2  ;;  %v3420_v32 = vpop.f32.mrf.mxu3 }
 0xb51   : > { %v3407_v44 = vadd.f32 %v4886_v34, %v3406_v30 }
 0xb53   : > { %v3421_v45 = vadd.f32 %v3420_v32, %v3407_v44 }
 0xb54   : > { %v3490_v50 = vpop.f32.mrf.mxu0  ;;  %v3504_v52 = vpop.f32.mrf.mxu1 }
 0xb55   : > { %v3435_v51 = vadd.f32 %v3434_v33, %v3421_v45 }
 0xb57   : > { %v3449_v55 = vadd.f32 %v3448_v35, %v3435_v51 }
 0xb58   : > { %v3460_v31 = vpop.f32.mrf.mxu2  ;;  %v3474_v37 = vpop.f32.mrf.mxu3 }
 0xb59   : > { %v3461_v49 = vadd.f32 %v3460_v31, %v3447_v46 }
 0xb5b   : > { %v3475_v53 = vadd.f32 %v3474_v37, %v3461_v49 }
 0xb5c   : > { %v3544_v63 = vpop.f32.mrf.mxu0  ;;  %v3558_v54 = vpop.f32.mrf.mxu1 }
 0xb5d   : > { %v3489_v56 = vadd.f32 %v3488_v41, %v3475_v53 }
 0xb5f   : > { %v3503_v38 = vadd.f32 %v3502_v42, %v3489_v56 }
 0xb60   : > { %v3462_v47 = vpop.f32.mrf.mxu2  ;;  %v3476_v48 = vpop.f32.mrf.mxu3 }
 0xb61   : > { %v3463_v58 = vadd.f32 %v3462_v47, %v3449_v55 }
 0xb63   : > { %v3477_v0 = vadd.f32 %v3476_v48, %v3463_v58 }
 0xb64   : > { %v3546_v3 = vpop.f32.mrf.mxu0  ;;  %v3560_v7 = vpop.f32.mrf.mxu1 }
 0xb65   : > { %v3491_v9 = vadd.f32 %v3490_v50, %v3477_v0  ;;  %v4888_v0 = vld [vmem:[%s658_s17] ss:$0 sm:$0xff]  ;;  %s5699_s17 = sld [smem:[#allocation11_spill]] (!%p4680_p5) }
 0xb67   : > { %v3505_v61 = vadd.f32 %v3504_v52, %v3491_v9 }
 0xb68   : > { %v3516_v59 = vpop.f32.mrf.mxu2  ;;  %v3530_v62 = vpop.f32.mrf.mxu3 }
 0xb69   : > { %v3517_v60 = vadd.f32 %v3516_v59, %v3503_v38 }
 0xb6b   : > { %v3531_v57 = vadd.f32 %v3530_v62, %v3517_v60  ;;  %v4887_v62 = vld [vmem:[%s655_s27] ss:$0 sm:$0xff] }
 0xb6d   : > { %v3545_v4 = vadd.f32 %v3544_v63, %v3531_v57 }
 0xb6f   : > { %v3559_v10 = vadd.f32 %v3558_v54, %v3545_v4 }
 0xb70   : > { %v3518_v11 = vpop.f32.mrf.mxu2  ;;  %v3532_v39 = vpop.f32.mrf.mxu3 }
 0xb71   : > { %v3519_v6 = vadd.f32 %v3518_v11, %v3505_v61 }
 0xb73   : > { %v3533_v8 = vadd.f32 %v3532_v39, %v3519_v6 }
 0xb75   : > { %v3547_v17 = vadd.f32 %v3546_v3, %v3533_v8 }
 0xb77   : > { %v3561_v19 = vadd.f32 %v3560_v7, %v3547_v17 }
 0xb7c   : > { %v3600_v16 = vpop.f32.mrf.mxu0  ;;  %v3614_v5 = vpop.f32.mrf.mxu1 }
 0xb84   : > { %v3602_v26 = vpop.f32.mrf.mxu0  ;;  %v3616_v30 = vpop.f32.mrf.mxu1 }
 0xb88   : > { %v3572_v12 = vpop.f32.mrf.mxu2  ;;  %v3586_v13 = vpop.f32.mrf.mxu3 }
 0xb89   : > { %v3573_v15 = vadd.f32 %v3572_v12, %v3559_v10 }
 0xb8b   : > { %v3587_v18 = vadd.f32 %v3586_v13, %v3573_v15 }
 0xb8d   : > { %v3601_v14 = vadd.f32 %v3600_v16, %v3587_v18 }
 0xb8f   : > { %v3615_v20 = vadd.f32 %v3614_v5, %v3601_v14 }
 0xb90   : > { %v3574_v21 = vpop.f32.mrf.mxu2  ;;  %v3588_v2 = vpop.f32.mrf.mxu3 }
 0xb91   : > { %v3575_v22 = vadd.f32 %v3574_v21, %v3561_v19  ;;  %v3619_v23 = vadd.f32 %v3615_v20, %v5395_v27 }
 0xb93   : > { %v3589_v24 = vadd.f32 %v3588_v2, %v3575_v22  ;;  %v3621_v25 = vsel %vm679_vm1, %v3619_v23, 0.0 }
 0xb94   : > { %3622 = vadd.xlane.f32.xlu2 %v3621_v25 }
 0xb95   : > { %v3603_v29 = vadd.f32 %v3602_v26, %v3589_v24 }
 0xb97   : > { %v3617_v32 = vadd.f32 %v3616_v30, %v3603_v29 }
 0xb99   : > { %v3620_v33 = vadd.f32 %v3617_v32, %v5397_v28 }
 0xb9b   : > { %v3624_v34 = vsel %vm679_vm1, %v3620_v33, 0.0 }
 0xb9c   : > { %3625 = vadd.xlane.f32.xlu0 %v3624_v34 }
 0xc07   : > { %v3623_v35 = vpop.xlane.xlu2 %3622 }
 0xc08   : > { %v3627_v36 = vmul.f32 %v3623_v35, %v5330_v1 }
 0xc0a   : > { %v3629_v31 = vsub.f32 %v3619_v23, %v3627_v36 }
 0xc0c   : > { %v3631_v37 = vmul.f32 %v3629_v31, %v3629_v31 }
 0xc0e   : > { %v3633_v27 = vsel %vm679_vm1, %v3631_v37, 0.0 }
 0xc0f   : > { %v3626_v40 = vpop.xlane.xlu0 %3625  ;;  %3634 = vadd.xlane.f32.xlu1 %v3633_v27 }
 0xc10   : > { %v3628_v41 = vmul.f32 %v3626_v40, %v5330_v1 }
 0xc12   : > { %v3630_v42 = vsub.f32 %v3620_v33, %v3628_v41 }
 0xc14   : > { %v3632_v43 = vmul.f32 %v3630_v42, %v3630_v42 }
 0xc16   : > { %v3636_v44 = vsel %vm679_vm1, %v3632_v43, 0.0 }
 0xc17   : > { %3637 = vadd.xlane.f32.xlu2 %v3636_v44 }
 0xc82   : > { %v3635_v28 = vpop.xlane.xlu1 %3634 }
 0xc83   : > { %v3639_v45 = vmul.f32 %v3635_v28, %v5330_v1 }
 0xc85   : > { %v3641_v46 = vadd.f32 1e-05, %v3639_v45 }
 0xc87   : > { %4927 = vrsqrt.f32 %v3641_v46  ;;  %vm3649_vm14 = vweird.f32 %v3641_v46 }
 0xc8a   : > { %v3638_v47 = vpop.xlane.xlu2 %3637 }
 0xc8b   : > { %v3640_v48 = vmul.f32 %v3638_v47, %v5330_v1 }
 0xc8d   : > { %v4928_v49 = vpop.eup %4927  ;;  %v3642_v50 = vadd.f32 1e-05, %v3640_v48 }
 0xc8e   : > { %v3644_v51 = vmul.f32 %v4928_v49, %v3641_v46  ;;  %vm3650_vm13 = vweird.f32 %v4928_v49 }
 0xc8f   : > { %4929 = vrsqrt.f32 %v3642_v50  ;;  %vm3651_vm15 = vmor %vm3649_vm14, %vm3650_vm13  ;;  %vm3659_vm3 = vweird.f32 %v3642_v50 }
 0xc90   : > { %v3645_v52 = vmul.f32 %v4928_v49, %v3644_v51 }
 0xc92   : > { %v3646_v53 = vmul.f32 0.5, %v3645_v52 }
 0xc94   : > { %v3647_v55 = vsub.f32 1.5, %v3646_v53 }
 0xc95   : > { %v4930_v56 = vpop.eup %4929 }
 0xc96   : > { %v3648_v58 = vmul.f32 %v4928_v49, %v3647_v55  ;;  %v3654_v59 = vmul.f32 %v4930_v56, %v3642_v50  ;;  %vm3660_vm0 = vweird.f32 %v4930_v56 }
 0xc97   : > { %vm3661_vm4 = vmor %vm3659_vm3, %vm3660_vm0 }
 0xc98   : > { %v3652_v1 = vsel %vm3651_vm15, %v4928_v49, %v3648_v58  ;;  %v3655_v63 = vmul.f32 %v4930_v56, %v3654_v59 }
 0xc99   : > { %v3663_v38 = vmul.f32 %v3652_v1, %v3629_v31 }
 0xc9a   : > { %v3656_v54 = vmul.f32 0.5, %v3655_v63 }
 0xc9b   : > { %v3669_v60 = vmul.f32 %v4887_v62, %v3663_v38 }
 0xc9c   : > { %v3657_v9 = vsub.f32 1.5, %v3656_v54 }
 0xc9d   : > { %v3675_v57 = vadd.f32 %v4888_v0, %v3669_v60 }
 0xc9e   : > { %v3658_v11 = vmul.f32 %v4930_v56, %v3657_v9 }
 0xc9f   : > { %3677 = vst.msk [vmem:[#allocation2] sm:$0xff] %vm679_vm1, %v3675_v57 }
 0xca0   : > { %v3662_v39 = vsel %vm3661_vm4, %v4930_v56, %v3658_v11 }
 0xca1   : > { %v3664_v61 = vmul.f32 %v3662_v39, %v3630_v42 }
 0xca3   : > { %v3670_v3 = vmul.f32 %v4887_v62, %v3664_v61  ;;  %3682 = sbr.rel (%p4680_p5) target bundleno = 3385 (0xd39), region = 88 }
 0xca5   : > { %v3676_v4 = vadd.f32 %v4888_v0, %v3670_v3 }
 0xca7   : > { %3678 = vst.msk [vmem:[#allocation2 + $0x8] sm:$0xff] %vm679_vm1, %v3676_v4 }
 0xca8   : > { %v3702_v6 = vld [vmem:[%s5699_s17 + $0x18] sm:$0xff]  ;;  %v3701_v7 = vld [vmem:[%s5699_s17 + $0x10] sm:$0xff]  ;;  %v3683_v8 = vsel %vm679_vm1, %v3675_v57, 0.0  ;;  %v3690_v10 = vsel %vm679_vm1, %v3676_v4, 0.0  ;;  %v3700_v15 = vld [vmem:[%s5699_s17 + $0x8] sm:$0xff]  ;;  %vm3709_vm5 = vcmask 1041409  }
 0xca9   : > { %3725 = vmatpush.msra.mxu0 %v3702_v6  ;;  %v3684_v12 = vrot.slane %v3683_v8, 4  ;;  %v3691_v13 = vrot.slane %v3690_v10, 4  ;;  %v3699_v18 = vld [vmem:[%s5699_s17] sm:$0xff]  ;;  %vm3733_vm6 = vcmask 17408  }
 0xcaa   : > { %v4931_v29 = vld [vmem:[%s5700_s25] ss:$0 sm:$0xff] }
 0xcab   : > { %3726 = vmatpush.msra.mxu0 %v3701_v7  ;;  %v3685_v16 = vadd.f32 %v3684_v12, %v3683_v8  ;;  %v3692_v17 = vadd.f32 %v3691_v13, %v3690_v10 }
 0xcad   : > { %3727 = vmatpush.msra.mxu0 %v3700_v15  ;;  %v3686_v5 = vrot.slane %v3685_v16, 2  ;;  %v3693_v14 = vrot.slane %v3692_v17, 2 }
 0xcaf   : > { %3728 = vmatpush.msra.mxu0 %v3699_v18  ;;  %v3687_v19 = vadd.f32 %v3686_v5, %v3685_v16  ;;  %v3694_v20 = vadd.f32 %v3693_v14, %v3692_v17 }
 0xcb1   : > { %v3688_v21 = vrot.slane %v3687_v19, 1  ;;  %v3695_v22 = vrot.slane %v3694_v20, 1 }
 0xcb3   : > { %v3689_v23 = vadd.f32 %v3688_v21, %v3687_v19  ;;  %v3696_v2 = vadd.f32 %v3695_v22, %v3694_v20 }
 0xcb5   : > { %v3697_v24 = vmul.f32 0.125, %v3689_v23  ;;  %v3698_v25 = vmul.f32 0.125, %v3696_v2 }
 0xcb7   : > { %v3710_v26 = vsel %vm3709_vm5, %v3698_v25, %v3697_v24 }
 0xcb8   : > { %4681 = vmatmul.msk.f32.vlgmr.msra.gmra.mxu0 %vm679_vm1, %v3710_v26 }
 0xd35   : > { %v3730_v30 = vpop.f32.mrf.mxu0 }
 0xd36   : > { %v3731_v32 = vadd.f32 %v4931_v29, %v3730_v30 }
 0xd38   : > { %3734 = vst.msk [vmem:[#allocation3] sm:$0x3] %vm3733_vm6, %v3731_v32 }
 0xd39 PF: > { %p4859_p6 = scmp.eq.s32.totalorder %s5060_s19, 2  ;;  %s4973_s21 = smov [#allocation3]  }
 0xd3a   : > { %s3741_s28 = sshll.u32 %s4973_s21, 4  ;;  %s5701_s3 = sld [smem:[#allocation13_spill]]  ;;  %s3742_s28 = int_to_ptr.vmem [resolvable:$true] %s3741_s28 }
 0xd40   : > { %s3743_s13 = sshll.u32 %s5701_s3, 4  ;;  %s3744_s13 = int_to_ptr.hbm [resolvable:$true] %s3743_s13 }
 0xd41   : > { %4856 = dma.vmem_to_hbm [thread:$0]  (%p4859_p6), %s3742_s28, 32, %s3744_s13, [#allocation4]  }
 0xd42   : > { %4965 = dma.done.wait (%p4859_p6), [#allocation4], 32  }
 0xd43   : > { %4967 = vsyncadd (%p4859_p6), [#allocation4], 4294967264 }
 0xd44 PF: > { %s5702_s30 = sld [smem:[#allocation6_spill]] }
 0xd4a   : > { %s26_s18 = sadd.s32 1, %s5702_s30  }
 0xd4b   : > { %p23_p7 = scmp.ge.s32.totalorder %s26_s18, 5  }
 0xd4d   :  { %25 = sbr.rel (!%p23_p7) target bundleno = 9 (0x9), region = 173 }
 0xd52   :  { %3757 = vsyncpa [#allocation4], 1 }
 0xd53   :  { %3759 = vsyncpa [#allocation4 + $0x1], 1 }

</bundles_post_ra>
